<compile_context>
chip_gen: v5e
topology: v5e:2x2
jax: 0.10.0
libtpu: 0.0.40
codegen_flags: <defaults>
</compile_context>

<pallas_src>
import functools

import jax
import jax.numpy as jnp
from jax.experimental import pallas as pl
from jax.experimental.pallas import tpu as pltpu


# --------------------------- fused kernel -----------------------------------

def _fused_kernel(xs_ref, xc_ref, wt_ref, wb_ref, b_ref, w1_ref, w2_ref,
                  out_ref, feat_ref, sum_ref, scale_ref, *, inv_hw):
    # xs_ref  : (1, T, C1)   f32    spatial tile of fsp (NHWC-flattened)
    # xc_ref  : (1, T, C2)   f32    spatial tile of fcp
    # wt_ref  : (C1, Cout)   bf16   folded conv weight rows for fsp channels
    # wb_ref  : (C2, Cout)   bf16   folded conv weight rows for fcp channels
    # b_ref   : (1, Cout)    f32    folded BN bias
    # w1_ref  : (Cout, Cmid) f32    SE reduce 1x1 conv
    # w2_ref  : (Cmid, Cout) f32    SE expand 1x1 conv
    # out_ref : (1, T, Cout) f32
    # feat_ref: (nt, T, Cout) bf16  VMEM-resident feat for this batch element
    # sum_ref : (1, Cout)    f32    pooled channel sums
    # scale_ref:(1, Cout)    f32    sigmoid(SE) + 1
    p = pl.program_id(1)
    t = pl.program_id(2)
    nt = pl.num_programs(2)

    @pl.when(p == 0)
    def _compute_feat():
        @pl.when(t == 0)
        def _():
            sum_ref[...] = jnp.zeros_like(sum_ref)

        # bf16 operands on the MXU, f32 accumulation; inputs are cast here so
        # HBM only ever sees the 4-byte originals once.
        # TODO(synk): on v6e/v7x stage xs|xc into one (T, C1+C2) slab so a
        # single K=256 dot fills the 256-wide MXU contraction.
        acc = jnp.dot(xs_ref[0].astype(jnp.bfloat16), wt_ref[...],
                      preferred_element_type=jnp.float32)
        acc = acc + jnp.dot(xc_ref[0].astype(jnp.bfloat16), wb_ref[...],
                            preferred_element_type=jnp.float32)
        feat = jnp.maximum(acc + b_ref[...], 0.0)            # (T, Cout) f32
        feat_ref[t] = feat.astype(feat_ref.dtype)            # bf16 resident
        sum_ref[...] += jnp.sum(feat, axis=0, keepdims=True)

        @pl.when(t == nt - 1)
        def _():
            mean = sum_ref[...] * inv_hw                     # (1, Cout)
            a1 = jnp.maximum(
                jnp.dot(mean, w1_ref[...],
                        preferred_element_type=jnp.float32), 0.0)
            a2 = jnp.dot(a1, w2_ref[...],
                         preferred_element_type=jnp.float32)
            scale_ref[...] = jax.nn.sigmoid(a2) + 1.0        # atten + 1

    @pl.when(p == 1)
    def _scale_and_store():
        # feat*atten + feat == feat * (atten + 1)
        feat = feat_ref[t].astype(jnp.float32)               # (T, Cout)
        out_ref[...] = (feat * scale_ref[...])[None]


# --------------------------- two-pass fallback -------------------------------

def _feat_kernel(xs_ref, xc_ref, wt_ref, wb_ref, b_ref, feat_ref, sum_ref):
    # feat_ref: (1, T, Cout) bf16 (halves the HBM round trip of the two-pass
    # path); sum_ref: (1, 1, Cout) f32, resident across the spatial axis.
    acc = jnp.dot(xs_ref[0].astype(jnp.bfloat16), wt_ref[...],
                  preferred_element_type=jnp.float32)
    acc = acc + jnp.dot(xc_ref[0].astype(jnp.bfloat16), wb_ref[...],
                        preferred_element_type=jnp.float32)
    feat = jnp.maximum(acc + b_ref[...], 0.0)                # (T, Cout) f32
    feat_ref[...] = feat.astype(feat_ref.dtype)[None]

    @pl.when(pl.program_id(1) == 0)
    def _():
        sum_ref[...] = jnp.zeros_like(sum_ref)

    sum_ref[...] += jnp.sum(feat, axis=0, keepdims=True)[None]


def _scale_kernel(scale_ref, feat_ref, out_ref):
    # Pure VPU multiply stream; SE attention was computed once per batch
    # element outside this kernel.
    out_ref[...] = (feat_ref[0].astype(jnp.float32) * scale_ref[0])[None]


# --------------------------- wrappers ----------------------------------------

def _pick_tile(hw, tile_hw):
    """Largest divisor of hw that is a multiple of 8 and <= tile_hw."""
    cap = min(tile_hw, hw)
    for cand in range(cap, 7, -1):
        if hw % cand == 0 and cand % 8 == 0:
            return cand
    # TODO(synk): masked ragged tiles (pad + mask padded rows before pooling).
    return hw


def _vmem_budget():
    try:
        cap = int(pltpu.get_tpu_info().vmem_capacity_bytes)
    except Exception:
        cap = 64 << 20          # be v7x-safe if the query is unavailable
    return (cap * 3) // 4       # headroom for Mosaic internals


def feature_fusion_module_nhwc(xs, xc, params, *, tile_hw=1024,
                               force_two_pass=False):
    """xs: (N, HW, C1), xc: (N, HW, C2) f32 channels-last -> (N, HW, Cout) f32."""
    w_top, w_bot, b_eff, w1_mat, w2_mat = params
    N, HW, C1 = xs.shape
    C2 = xc.shape[-1]
    Cout = w_top.shape[1]
    Cmid = w1_mat.shape[1]

    T = _pick_tile(HW, tile_hw)
    nt = HW // T

    xs = xs.astype(jnp.float32)
    xc = xc.astype(jnp.float32)
    wt_bf = w_top.astype(jnp.bfloat16)
    wb_bf = w_bot.astype(jnp.bfloat16)
    b2d = b_eff.reshape(1, Cout).astype(jnp.float32)
    w1 = w1_mat.astype(jnp.float32)
    w2 = w2_mat.astype(jnp.float32)

    budget = _vmem_budget()
    headroom = 2 << 20
    stream = 2 * (T * C1 * 4 + T * C2 * 4) + 2 * T * Cout * 4
    weights = (C1 + C2) * Cout * 2 + Cout * 4 + 2 * Cout * Cmid * 4
    fused_need = HW * Cout * 2 + stream + weights + 2 * Cout * 4 + headroom

    if not force_two_pass and fused_need <= budget:
        # ---- fused path: feat never leaves VMEM ----
        out = pl.pallas_call(
            functools.partial(_fused_kernel, inv_hw=1.0 / HW),
            out_shape=jax.ShapeDtypeStruct((N, HW, Cout), jnp.float32),
            grid=(N, 2, nt),
            in_specs=[
                # pin inputs to the last spatial tile during phase 1 (no DMA)
                pl.BlockSpec((1, T, C1),
                             lambda b, p, t: (b, t + p * (nt - 1 - t), 0)),
                pl.BlockSpec((1, T, C2),
                             lambda b, p, t: (b, t + p * (nt - 1 - t), 0)),
                pl.BlockSpec((C1, Cout), lambda b, p, t: (0, 0)),
                pl.BlockSpec((C2, Cout), lambda b, p, t: (0, 0)),
                pl.BlockSpec((1, Cout), lambda b, p, t: (0, 0)),
                pl.BlockSpec((Cout, Cmid), lambda b, p, t: (0, 0)),
                pl.BlockSpec((Cmid, Cout), lambda b, p, t: (0, 0)),
            ],
            # pin the output block to tile 0 during phase 0 so nothing is
            # written back before phase 1 fully overwrites it
            out_specs=pl.BlockSpec((1, T, Cout),
                                   lambda b, p, t: (b, t * p, 0)),
            scratch_shapes=[
                pltpu.VMEM((nt, T, Cout), jnp.bfloat16),   # resident feat
                pltpu.VMEM((1, Cout), jnp.float32),        # pooled sums
                pltpu.VMEM((1, Cout), jnp.float32),        # atten + 1
            ],
            compiler_params=pltpu.CompilerParams(
                dimension_semantics=("parallel", "arbitrary", "arbitrary"),
                vmem_limit_bytes=int(min(max(fused_need, 16 << 20), budget))),
        )(xs, xc, wt_bf, wb_bf, b2d, w1, w2)
        return out

    # ---- two-pass fallback: feat takes a bf16 HBM round trip ----
    p1_need = (2 * (T * C1 * 4 + T * C2 * 4) + 2 * T * Cout * 2
               + weights + 4 * Cout * 4 + headroom)
    feat, sums = pl.pallas_call(
        _feat_kernel,
        out_shape=(
            jax.ShapeDtypeStruct((N, HW, Cout), jnp.bfloat16),
            jax.ShapeDtypeStruct((N, 1, Cout), jnp.float32),
        ),
        grid=(N, nt),
        in_specs=[
            pl.BlockSpec((1, T, C1), lambda b, t: (b, t, 0)),
            pl.BlockSpec((1, T, C2), lambda b, t: (b, t, 0)),
            pl.BlockSpec((C1, Cout), lambda b, t: (0, 0)),
            pl.BlockSpec((C2, Cout), lambda b, t: (0, 0)),
            pl.BlockSpec((1, Cout), lambda b, t: (0, 0)),
        ],
        out_specs=[
            pl.BlockSpec((1, T, Cout), lambda b, t: (b, t, 0)),
            pl.BlockSpec((1, 1, Cout), lambda b, t: (b, 0, 0)),
        ],
        compiler_params=pltpu.CompilerParams(
            dimension_semantics=("parallel", "arbitrary"),
            vmem_limit_bytes=int(min(max(p1_need, 16 << 20), budget))),
    )(xs, xc, wt_bf, wb_bf, b2d)

    # SE attention once per batch element (tiny XLA matmuls between calls).
    mean = sums[:, 0, :] * (1.0 / HW)                        # (N, Cout)
    a1 = jnp.maximum(mean @ w1, 0.0)
    scale = (jax.nn.sigmoid(a1 @ w2) + 1.0)[:, None, :]      # (N, 1, Cout)

    p2_need = 2 * T * Cout * 2 + 2 * T * Cout * 4 + 2 * Cout * 4 + headroom
    out = pl.pallas_call(
        _scale_kernel,
        out_shape=jax.ShapeDtypeStruct((N, HW, Cout), jnp.float32),
        grid=(N, nt),
        in_specs=[
            pl.BlockSpec((1, 1, Cout), lambda b, t: (b, 0, 0)),
            pl.BlockSpec((1, T, Cout), lambda b, t: (b, t, 0)),
        ],
        out_specs=pl.BlockSpec((1, T, Cout), lambda b, t: (b, t, 0)),
        compiler_params=pltpu.CompilerParams(
            dimension_semantics=("parallel", "parallel"),
            vmem_limit_bytes=int(min(max(p2_need, 16 << 20), budget))),
    )(scale, feat)
    return out


def feature_fusion_module(fsp, fcp, params, *, tile_hw=1024,
                          force_two_pass=False):
    """NCHW in / NCHW out, matching the torch module's forward.

    The NCHW<->NHWC relayouts are XLA glue; production callers should feed
    channels-last activations to feature_fusion_module_nhwc directly.
    """
    N, C1, H, W = fsp.shape
    C2 = fcp.shape[1]
    Cout = params[0].shape[1]
    xs = jnp.transpose(fsp, (0, 2, 3, 1)).reshape(N, H * W, C1)
    xc = jnp.transpose(fcp, (0, 2, 3, 1)).reshape(N, H * W, C2)
    out = feature_fusion_module_nhwc(xs, xc, params, tile_hw=tile_hw,
                                     force_two_pass=force_two_pass)
    return jnp.transpose(out.reshape(N, H, W, Cout), (0, 3, 1, 2))


# --------------------------- params + reference ------------------------------

def make_params(key, c_sp, c_cp, out_chan, eps=1e-5):
    """Synthetic parameters with BN (eval mode) folded into the 1x1 conv."""
    in_chan = c_sp + c_cp
    mid = out_chan // 4
    ks = jax.random.split(key, 7)
    w_conv = jax.random.normal(ks[0], (out_chan, in_chan), jnp.float32) * 0.05
    gamma = 1.0 + 0.1 * jax.random.normal(ks[1], (out_chan,), jnp.float32)
    beta = 0.1 * jax.random.normal(ks[2], (out_chan,), jnp.float32)
    running_mean = 0.1 * jax.random.normal(ks[3], (out_chan,), jnp.float32)
    running_var = 0.5 + jax.random.uniform(ks[4], (out_chan,), jnp.float32)
    w1 = jax.random.normal(ks[5], (mid, out_chan), jnp.float32) * 0.1
    w2 = jax.random.normal(ks[6], (out_chan, mid), jnp.float32) * 0.1

    scale = gamma / jnp.sqrt(running_var + eps)
    w_eff = (w_conv * scale[:, None]).T                 # (in_chan, out_chan)
    b_eff = beta - running_mean * scale                 # (out_chan,)
    w_top = w_eff[:c_sp]                                # rows for fsp channels
    w_bot = w_eff[c_sp:]                                # rows for fcp channels
    return w_top, w_bot, b_eff, w1.T, w2.T


def reference(fsp, fcp, params):
    """Pure-JAX reference of the torch forward, mirroring kernel numerics:
    bf16 matmul operands with f32 accumulation, and feat quantized to bf16
    (as the kernel stores it) before the final scale."""
    w_top, w_bot, b_eff, w1_mat, w2_mat = params
    xs = jnp.transpose(fsp, (0, 2, 3, 1))               # NHWC
    xc = jnp.transpose(fcp, (0, 2, 3, 1))
    feat = jnp.einsum("nhwc,cd->nhwd", xs.astype(jnp.bfloat16),
                      w_top.astype(jnp.bfloat16),
                      preferred_element_type=jnp.float32)
    feat = feat + jnp.einsum("nhwc,cd->nhwd", xc.astype(jnp.bfloat16),
                             w_bot.astype(jnp.bfloat16),
                             preferred_element_type=jnp.float32)
    feat = jnp.maximum(feat + b_eff, 0.0)
    atten = jnp.mean(feat, axis=(1, 2), keepdims=True)  # (N,1,1,Cout)
    a1 = jnp.maximum(jnp.einsum("nhwc,cd->nhwd", atten, w1_mat), 0.0)
    scl = jax.nn.sigmoid(jnp.einsum("nhwc,cd->nhwd", a1, w2_mat)) + 1.0
    featq = feat.astype(jnp.bfloat16).astype(jnp.float32)
    out = featq * scl                                    # feat*atten + feat
    return jnp.transpose(out, (0, 3, 1, 2))              # NCHW


if __name__ == "__main__":
    # Lane-dense shapes: Cout=128, HW=1024 tiled by 256 (4 spatial tiles).
    N, H, W = 2, 32, 32
    c_sp, c_cp = 128, 128       # fsp / fcp channels
    out_chan = 128              # Cmid = 32

    key = jax.random.PRNGKey(0)
    k_fsp, k_fcp, k_par = jax.random.split(key, 3)
    fsp = jax.random.normal(k_fsp, (N, c_sp, H, W), jnp.float32)
    fcp = jax.random.normal(k_fcp, (N, c_cp, H, W), jnp.float32)
    params = make_params(k_par, c_sp, c_cp, out_chan)

    ref = jax.block_until_ready(reference(fsp, fcp, params))

    # Fused path (default): multiple spatial tiles to exercise the phase grid.
    out = jax.block_until_ready(
        feature_fusion_module(fsp, fcp, params, tile_hw=256))
    assert out.shape == (N, out_chan, H, W)
    err = float(jnp.max(jnp.abs(out - ref)))
    assert jnp.allclose(out, ref, atol=5e-3, rtol=5e-3), ("fused", err)

    # Two-pass fallback (used when the resident feat scratch would not fit).
    out2 = jax.block_until_ready(
        feature_fusion_module(fsp, fcp, params, tile_hw=256,
                              force_two_pass=True))
    err2 = float(jnp.max(jnp.abs(out2 - ref)))
    assert jnp.allclose(out2, ref, atol=5e-3, rtol=5e-3), ("two_pass", err2)

    print("KERNEL_OK")
</pallas_src>

<mosaic_0001>
module attributes {stable_mosaic.version = 11 : i64} {
  func.func @_fused_kernel(%arg0: i32, %arg1: i32, %arg2: i32, %arg3: memref<1x256x128xf32, #tpu.memory_space<vmem>>, %arg4: memref<1x256x128xf32, #tpu.memory_space<vmem>>, %arg5: memref<128x128xbf16, #tpu.memory_space<vmem>>, %arg6: memref<128x128xbf16, #tpu.memory_space<vmem>>, %arg7: memref<1x128xf32, #tpu.memory_space<vmem>>, %arg8: memref<128x32xf32, #tpu.memory_space<vmem>>, %arg9: memref<32x128xf32, #tpu.memory_space<vmem>>, %arg10: memref<1x256x128xf32, #tpu.memory_space<vmem>>, %arg11: memref<4x256x128xbf16, #tpu.memory_space<vmem>>, %arg12: memref<1x128xf32, #tpu.memory_space<vmem>>, %arg13: memref<1x128xf32, #tpu.memory_space<vmem>>) attributes {dimension_semantics = [#tpu.dimension_semantics<parallel>, #tpu.dimension_semantics<arbitrary>, #tpu.dimension_semantics<arbitrary>], iteration_bounds = array<i64: 2, 2, 4>, scalar_prefetch = 0 : i64, scratch_operands = 3 : i64, tpu.core_type = #tpu.core_type<tc>, window_params = [{transform_indices = @transform_0, window_bounds = array<i64: 1, 256, 128>}, {transform_indices = @transform_1, window_bounds = array<i64: 1, 256, 128>}, {pipeline_mode = #tpu.pipeline_mode<synchronous>, transform_indices = @transform_2, window_bounds = array<i64: 128, 128>}, {pipeline_mode = #tpu.pipeline_mode<synchronous>, transform_indices = @transform_3, window_bounds = array<i64: 128, 128>}, {pipeline_mode = #tpu.pipeline_mode<synchronous>, transform_indices = @transform_4, window_bounds = array<i64: 1, 128>}, {pipeline_mode = #tpu.pipeline_mode<synchronous>, transform_indices = @transform_5, window_bounds = array<i64: 128, 32>}, {pipeline_mode = #tpu.pipeline_mode<synchronous>, transform_indices = @transform_6, window_bounds = array<i64: 32, 128>}, {transform_indices = @transform_7, window_bounds = array<i64: 1, 256, 128>}]} {
    %c0_i32 = arith.constant 0 : i32
    %0 = arith.cmpi eq, %arg1, %c0_i32 : i32
    %1 = arith.extui %0 : i1 to i32
    %c0_i32_0 = arith.constant 0 : i32
    %2 = arith.cmpi ne, %1, %c0_i32_0 : i32
    scf.if %2 {
      %c0_i32_2 = arith.constant 0 : i32
      %6 = arith.cmpi eq, %arg2, %c0_i32_2 : i32
      %7 = arith.extui %6 : i1 to i32
      %c0_i32_3 = arith.constant 0 : i32
      %8 = arith.cmpi ne, %7, %c0_i32_3 : i32
      scf.if %8 {
        %cst_25 = arith.constant 0.000000e+00 : f32
        %38 = vector.broadcast %cst_25 : f32 to vector<1x128xf32>
        %c0_26 = arith.constant 0 : index
        %c0_27 = arith.constant 0 : index
        %39 = vector.load %arg12[%c0_26, %c0_27] : memref<1x128xf32, #tpu.memory_space<vmem>>, vector<1x128xf32>
        tpu.vector_store %arg12[%c0_26, %c0_27], %38 {strides = array<i32>} : memref<1x128xf32, #tpu.memory_space<vmem>>, vector<1x128xf32>,
      } else {
      }
      %c0 = arith.constant 0 : index
      %c0_4 = arith.constant 0 : index
      %c0_5 = arith.constant 0 : index
      %9 = vector.load %arg3[%c0, %c0_4, %c0_5] : memref<1x256x128xf32, #tpu.memory_space<vmem>>, vector<1x256x128xf32>
      %10 = vector.shape_cast %9 : vector<1x256x128xf32> to vector<256x128xf32>
      %11 = arith.truncf %10 : vector<256x128xf32> to vector<256x128xbf16>
      %c0_6 = arith.constant 0 : index
      %c0_7 = arith.constant 0 : index
      %12 = vector.load %arg5[%c0_6, %c0_7] : memref<128x128xbf16, #tpu.memory_space<vmem>>, vector<128x128xbf16>
      %cst = arith.constant dense<0.000000e+00> : vector<256x128xf32>
      %13 = tpu.matmul %11, %12, %cst {dimension_numbers = #tpu.dot_dimension_numbers<[1], [0], [0], [1], [0, 0, 1, 1], [], []>} : vector<256x128xbf16>, vector<128x128xbf16>, vector<256x128xf32> -> vector<256x128xf32>
      %c0_8 = arith.constant 0 : index
      %c0_9 = arith.constant 0 : index
      %c0_10 = arith.constant 0 : index
      %14 = vector.load %arg4[%c0_8, %c0_9, %c0_10] : memref<1x256x128xf32, #tpu.memory_space<vmem>>, vector<1x256x128xf32>
      %15 = vector.shape_cast %14 : vector<1x256x128xf32> to vector<256x128xf32>
      %16 = arith.truncf %15 : vector<256x128xf32> to vector<256x128xbf16>
      %c0_11 = arith.constant 0 : index
      %c0_12 = arith.constant 0 : index
      %17 = vector.load %arg6[%c0_11, %c0_12] : memref<128x128xbf16, #tpu.memory_space<vmem>>, vector<128x128xbf16>
      %cst_13 = arith.constant dense<0.000000e+00> : vector<256x128xf32>
      %18 = tpu.matmul %16, %17, %cst_13 {dimension_numbers = #tpu.dot_dimension_numbers<[1], [0], [0], [1], [0, 0, 1, 1], [], []>} : vector<256x128xbf16>, vector<128x128xbf16>, vector<256x128xf32> -> vector<256x128xf32>
      %19 = arith.addf %13, %18 : vector<256x128xf32>
      %c0_14 = arith.constant 0 : index
      %c0_15 = arith.constant 0 : index
      %20 = vector.load %arg7[%c0_14, %c0_15] : memref<1x128xf32, #tpu.memory_space<vmem>>, vector<1x128xf32>
      %21 = vector.broadcast %20 : vector<1x128xf32> to vector<256x128xf32>
      %22 = arith.addf %19, %21 : vector<256x128xf32>
      %cst_16 = arith.constant 0.000000e+00 : f32
      %23 = vector.broadcast %cst_16 : f32 to vector<256x128xf32>
      %24 = arith.maximumf %22, %23 : vector<256x128xf32>
      %25 = arith.truncf %24 : vector<256x128xf32> to vector<256x128xbf16>
      %26 = arith.index_cast %arg2 : i32 to index
      %c0_17 = arith.constant 0 : index
      %c0_18 = arith.constant 0 : index
      %27 = vector.load %arg11[%26, %c0_17, %c0_18] : memref<4x256x128xbf16, #tpu.memory_space<vmem>>, vector<1x256x128xbf16>
      %28 = vector.shape_cast %27 : vector<1x256x128xbf16> to vector<256x128xbf16>
      %29 = vector.shape_cast %25 : vector<256x128xbf16> to vector<1x256x128xbf16>
      tpu.vector_store %arg11[%26, %c0_17, %c0_18], %29 {strides = array<i32>} : memref<4x256x128xbf16, #tpu.memory_space<vmem>>, vector<1x256x128xbf16>,
      %c0_19 = arith.constant 0 : index
      %c0_20 = arith.constant 0 : index
      %30 = vector.load %arg12[%c0_19, %c0_20] : memref<1x128xf32, #tpu.memory_space<vmem>>, vector<1x128xf32>
      %cst_21 = arith.constant dense<0.000000e+00> : vector<128xf32>
      %31 = vector.multi_reduction <add>, %24, %cst_21 [0] : vector<256x128xf32> to vector<128xf32>
      %32 = vector.shape_cast %31 : vector<128xf32> to vector<1x128xf32>
      %33 = arith.addf %30, %32 : vector<1x128xf32>
      %c0_22 = arith.constant 0 : index
      %c0_23 = arith.constant 0 : index
      %34 = vector.load %arg12[%c0_22, %c0_23] : memref<1x128xf32, #tpu.memory_space<vmem>>, vector<1x128xf32>
      tpu.vector_store %arg12[%c0_22, %c0_23], %33 {strides = array<i32>} : memref<1x128xf32, #tpu.memory_space<vmem>>, vector<1x128xf32>,
      %c3_i32 = arith.constant 3 : i32
      %35 = arith.cmpi eq, %arg2, %c3_i32 : i32
      %36 = arith.extui %35 : i1 to i32
      %c0_i32_24 = arith.constant 0 : i32
      %37 = arith.cmpi ne, %36, %c0_i32_24 : i32
      scf.if %37 {
        %c0_25 = arith.constant 0 : index
        %c0_26 = arith.constant 0 : index
        %38 = vector.load %arg12[%c0_25, %c0_26] : memref<1x128xf32, #tpu.memory_space<vmem>>, vector<1x128xf32>
        %cst_27 = arith.constant 9.765625E-4 : f32
        %39 = vector.broadcast %cst_27 : f32 to vector<1x128xf32>
        %40 = arith.mulf %38, %39 : vector<1x128xf32>
        %c0_28 = arith.constant 0 : index
        %c0_29 = arith.constant 0 : index
        %41 = vector.load %arg8[%c0_28, %c0_29] : memref<128x32xf32, #tpu.memory_space<vmem>>, vector<128x32xf32>
        %cst_30 = arith.constant dense<0.000000e+00> : vector<1x32xf32>
        %42 = tpu.matmul %40, %41, %cst_30 {dimension_numbers = #tpu.dot_dimension_numbers<[1], [0], [0], [1], [0, 0, 1, 1], [], []>} : vector<1x128xf32>, vector<128x32xf32>, vector<1x32xf32> -> vector<1x32xf32>
        %cst_31 = arith.constant 0.000000e+00 : f32
        %43 = vector.broadcast %cst_31 : f32 to vector<1x32xf32>
        %44 = arith.maximumf %42, %43 : vector<1x32xf32>
        %c0_32 = arith.constant 0 : index
        %c0_33 = arith.constant 0 : index
        %45 = vector.load %arg9[%c0_32, %c0_33] : memref<32x128xf32, #tpu.memory_space<vmem>>, vector<32x128xf32>
        %cst_34 = arith.constant dense<0.000000e+00> : vector<1x128xf32>
        %46 = tpu.matmul %44, %45, %cst_34 {dimension_numbers = #tpu.dot_dimension_numbers<[1], [0], [0], [1], [0, 0, 1, 1], [], []>} : vector<1x32xf32>, vector<32x128xf32>, vector<1x128xf32> -> vector<1x128xf32>
        %47 = arith.negf %46 : vector<1x128xf32>
        %48 = math.exp %47 : vector<1x128xf32>
        %cst_35 = arith.constant 1.000000e+00 : f32
        %49 = vector.broadcast %cst_35 : f32 to vector<1x128xf32>
        %50 = arith.addf %49, %48 : vector<1x128xf32>
        %51 = arith.divf %49, %50 : vector<1x128xf32>
        %cst_36 = arith.constant 1.000000e+00 : f32
        %52 = vector.broadcast %cst_36 : f32 to vector<1x128xf32>
        %53 = arith.addf %51, %52 : vector<1x128xf32>
        %c0_37 = arith.constant 0 : index
        %c0_38 = arith.constant 0 : index
        %54 = vector.load %arg13[%c0_37, %c0_38] : memref<1x128xf32, #tpu.memory_space<vmem>>, vector<1x128xf32>
        tpu.vector_store %arg13[%c0_37, %c0_38], %53 {strides = array<i32>} : memref<1x128xf32, #tpu.memory_space<vmem>>, vector<1x128xf32>,
      } else {
      }
    } else {
    }
    %c1_i32 = arith.constant 1 : i32
    %3 = arith.cmpi eq, %arg1, %c1_i32 : i32
    %4 = arith.extui %3 : i1 to i32
    %c0_i32_1 = arith.constant 0 : i32
    %5 = arith.cmpi ne, %4, %c0_i32_1 : i32
    scf.if %5 {
      %6 = arith.index_cast %arg2 : i32 to index
      %c0 = arith.constant 0 : index
      %c0_2 = arith.constant 0 : index
      %7 = vector.load %arg11[%6, %c0, %c0_2] : memref<4x256x128xbf16, #tpu.memory_space<vmem>>, vector<1x256x128xbf16>
      %8 = vector.shape_cast %7 : vector<1x256x128xbf16> to vector<256x128xbf16>
      %9 = arith.extf %8 : vector<256x128xbf16> to vector<256x128xf32>
      %c0_3 = arith.constant 0 : index
      %c0_4 = arith.constant 0 : index
      %10 = vector.load %arg13[%c0_3, %c0_4] : memref<1x128xf32, #tpu.memory_space<vmem>>, vector<1x128xf32>
      %11 = vector.broadcast %10 : vector<1x128xf32> to vector<256x128xf32>
      %12 = arith.mulf %9, %11 : vector<256x128xf32>
      %13 = vector.shape_cast %12 : vector<256x128xf32> to vector<1x256x128xf32>
      %c0_5 = arith.constant 0 : index
      %c0_6 = arith.constant 0 : index
      %c0_7 = arith.constant 0 : index
      %14 = vector.load %arg10[%c0_5, %c0_6, %c0_7] : memref<1x256x128xf32, #tpu.memory_space<vmem>>, vector<1x256x128xf32>
      tpu.vector_store %arg10[%c0_5, %c0_6, %c0_7], %13 {strides = array<i32>} : memref<1x256x128xf32, #tpu.memory_space<vmem>>, vector<1x256x128xf32>,
    } else {
    }
    return
  }
  func.func @transform_0(%arg0: i32, %arg1: i32, %arg2: i32) -> (i32, i32, i32) {
    %c3_i32 = arith.constant 3 : i32
    %0 = arith.subi %c3_i32, %arg2 : i32
    %1 = arith.muli %arg1, %0 : i32
    %2 = arith.addi %arg2, %1 : i32
    %c0_i32 = arith.constant 0 : i32
    %c0_i32_0 = arith.constant 0 : i32
    return %arg0, %2, %c0_i32 : i32, i32, i32
  }
  func.func @transform_1(%arg0: i32, %arg1: i32, %arg2: i32) -> (i32, i32, i32) {
    %c3_i32 = arith.constant 3 : i32
    %0 = arith.subi %c3_i32, %arg2 : i32
    %1 = arith.muli %arg1, %0 : i32
    %2 = arith.addi %arg2, %1 : i32
    %c0_i32 = arith.constant 0 : i32
    %c0_i32_0 = arith.constant 0 : i32
    return %arg0, %2, %c0_i32 : i32, i32, i32
  }
  func.func @transform_2(%arg0: i32, %arg1: i32, %arg2: i32) -> (i32, i32) {
    %c0_i32 = arith.constant 0 : i32
    %c0_i32_0 = arith.constant 0 : i32
    %c0_i32_1 = arith.constant 0 : i32
    return %c0_i32, %c0_i32_0 : i32, i32
  }
  func.func @transform_3(%arg0: i32, %arg1: i32, %arg2: i32) -> (i32, i32) {
    %c0_i32 = arith.constant 0 : i32
    %c0_i32_0 = arith.constant 0 : i32
    %c0_i32_1 = arith.constant 0 : i32
    return %c0_i32, %c0_i32_0 : i32, i32
  }
  func.func @transform_4(%arg0: i32, %arg1: i32, %arg2: i32) -> (i32, i32) {
    %c0_i32 = arith.constant 0 : i32
    %c0_i32_0 = arith.constant 0 : i32
    %c0_i32_1 = arith.constant 0 : i32
    return %c0_i32, %c0_i32_0 : i32, i32
  }
  func.func @transform_5(%arg0: i32, %arg1: i32, %arg2: i32) -> (i32, i32) {
    %c0_i32 = arith.constant 0 : i32
    %c0_i32_0 = arith.constant 0 : i32
    %c0_i32_1 = arith.constant 0 : i32
    return %c0_i32, %c0_i32_0 : i32, i32
  }
  func.func @transform_6(%arg0: i32, %arg1: i32, %arg2: i32) -> (i32, i32) {
    %c0_i32 = arith.constant 0 : i32
    %c0_i32_0 = arith.constant 0 : i32
    %c0_i32_1 = arith.constant 0 : i32
    return %c0_i32, %c0_i32_0 : i32, i32
  }
  func.func @transform_7(%arg0: i32, %arg1: i32, %arg2: i32) -> (i32, i32, i32) {
    %0 = arith.muli %arg2, %arg1 : i32
    %c0_i32 = arith.constant 0 : i32
    %c0_i32_0 = arith.constant 0 : i32
    return %arg0, %0, %c0_i32 : i32, i32, i32
  }
}

</mosaic_0001>

<bundles_post_ra>
// kernel: tpu_custom_call.1
= control target key start
LH: loop header
LB: loop body
LE: loop exit
PB: predicated region body
PF: predicated region fallthrough
CT: control target
= control target key end

     0   :  { %s2762_s0 = inlined_call_operand.hbm [shape: f32[2,1024,128], index: 0, kind: input, shape index: {}]   ;;  %s2763_s1 = inlined_call_operand.hbm [shape: f32[2,1024,128], index: 1, kind: input, shape index: {}]   ;;  %s2764_s2 = inlined_call_operand.vmem [shape: bf16[128,128], index: 2, kind: input, shape index: {}]   ;;  %s2765_s3 = inlined_call_operand.vmem [shape: bf16[128,128], index: 3, kind: input, shape index: {}]   ;;  %s2766_s4 = inlined_call_operand.vmem [shape: f32[1,128], index: 4, kind: input, shape index: {}]   ;;  %s2767_s5 = inlined_call_operand.vmem [shape: f32[128,32], index: 5, kind: input, shape index: {}]   ;;  %s2768_s6 = inlined_call_operand.vmem [shape: f32[32,128], index: 6, kind: input, shape index: {}]   ;;  %s2769_s7 = inlined_call_operand.hbm [shape: f32[2,1024,128], index: 7, kind: output, shape index: {}]  }
   0x1   :  { %2782 = sst [smem:[#allocation23_spill]] %s2762_s0 }
   0x2   :  { %2783 = sst [smem:[#allocation24_spill]] %s2763_s1 }
   0x3   :  { %2784 = sst [smem:[#allocation25_spill]] %s2764_s2 }
   0x4   :  { %2785 = sst [smem:[#allocation26_spill]] %s2765_s3 }
   0x5   :  { %2786 = sst [smem:[#allocation27_spill]] %s2766_s4 }
   0x6   :  { %2787 = sst [smem:[#allocation28_spill]] %s2767_s5 }
   0x7   :  { %2788 = sst [smem:[#allocation29_spill]] %s2768_s6 }
   0x8   :  { %2789 = sst [smem:[#allocation30_spill]] %s2769_s7 }
   0x9   :  { %12 = vsyncpa [#allocation6], 0 }
   0xa   :  { %14 = vsyncpa [#allocation6 + $0x1], 0 }
   0xb   :  { %15 = vsyncpa [#allocation9], 0 }
   0xc   :  { %17 = vsyncpa [#allocation9 + $0x1], 0 }
   0xd   :  { %18 = vsyncpa [#allocation7], 0 }
   0xe   :  { %20 = vsyncpa [#allocation7 + $0x1], 0  ;;  %s2051_s24 = smov 0   ;;  %s2053_s25 = smov 0  }
   0xf   :  { %s2055_s26 = smov 0   ;;  %s2057_s27 = smov 0  }
  0x10   :  { %s2059_s28 = smov 0   ;;  %s2061_s29 = smov 0  }
  0x11   :  { %s2063_s30 = smov 0   ;;  %s2065_s8 = smov 0  }
  0x12   :  { %s2067_s9 = smov 0   ;;  %s2069_s10 = smov 0  }
  0x13   :  { %s2071_s11 = smov 0   ;;  %s2073_s12 = smov 0  }
  0x14   :  { %s2075_s13 = smov 0  }
  0x15 LB: > { %2790 = sst [smem:[#allocation14_spill]] %s1976_s29  ;;  %s2772_s14 = sadd.s32 4294967295, %s2004_s13   ;;  %s2004_s13 = sphi %s2075_s13, %s26_s13   ;;  %s2000_s12 = sphi %s2073_s12, %s2826_s12   ;;  %s1996_s11 = sphi %s2071_s11, %s2825_s11   ;;  %s1992_s10 = sphi %s2069_s10, %s2824_s10   ;;  %s1988_s9 = sphi %s2067_s9, %s2823_s9   ;;  %s1984_s8 = sphi %s2065_s8, %s2822_s8   ;;  %s1980_s30 = sphi %s2063_s30, %s2821_s30   ;;  %s1976_s29 = sphi %s2061_s29, %s2820_s29   ;;  %s1972_s28 = sphi %s2059_s28, %s2831_s28   ;;  %s1968_s27 = sphi %s2057_s27, %s2830_s27   ;;  %s1964_s26 = sphi %s2055_s26, %s2829_s26   ;;  %s1960_s25 = sphi %s2053_s25, %s2828_s25   ;;  %s1956_s24 = sphi %s2051_s24, %s2827_s24  }
  0x16   : > { %2791 = sst [smem:[#allocation15_spill]] %s1988_s9  ;;  %s38_s16 = sadd.s32 1, %s1992_s10 }
  0x17   : > { %2792 = sst [smem:[#allocation16_spill]] %s1992_s10  ;;  %s41_s17 = sadd.s32 1, %s1996_s11 }
  0x18   : > { %2793 = sst [smem:[#allocation17_spill]] %s1996_s11  ;;  %p39_p0 = scmp.ge.s32.totalorder %s38_s16, 4 }
  0x19   : > { %2794 = sst [smem:[#allocation18_spill]] %s2000_s12  ;;  %s45_s18 = sadd.s32 1, %s2000_s12 }
  0x1a   : > { %s49_s19 = ssub.s32 3, %s1992_s10  ;;  %s60_s20 = sadd.s32 1, %s1976_s29 }
  0x1b   : > { %s2833_s16 = smov (%p39_p0, %s38_s16), 0  ;;  %s2835_s17 = smov (!%p39_p0, %s41_s17), %s1996_s11 }
  0x1c   : > { %2795 = sst [smem:[#allocation19_spill]] %s2833_s16  ;;  %s50_s21 = smul.u32 %s1996_s11, %s49_s19 }
  0x1d   : > { %s52_s22 = ssub.s32 3, %s2833_s16  ;;  %p43_p1 = scmp.ge.s32.totalorder %s2835_s17, 2 }
  0x1e   : > { %p67_p2 = scmp.ne.s32.totalorder %s1976_s29, %s1972_s28  ;;  %s2131_s23 = sadd.s32 %s1992_s10, %s50_s21 }
  0x1f   : > { %p68_p3 = scmp.eq.s32.totalorder %s2004_s13, 0  ;;  %s2837_s17 = smov (%p43_p1, %s2835_s17), 0 }
  0x20   : > { %2796 = sst [smem:[#allocation20_spill]] %s2837_s17  ;;  %s2839_s18 = smov (!%p43_p1, %s45_s18), %s2000_s12 }
  0x21   : > { %s53_s15 = smul.u32 %s52_s22, %s2837_s17  ;;  %p2138_p4 = por %p68_p3, %p67_p2 }
  0x22   : > { %p47_p5 = scmp.ge.s32.totalorder %s2839_s18, 2  ;;  %p73_p6 = scmp.ne.s32.totalorder %s1972_s28, %s1968_s27 }
  0x23   : > { %s54_s21 = sadd.s32 %s53_s15, %s2833_s16  ;;  %p74_p7 = scmp.eq.s32.totalorder %s2772_s14, 0 }
  0x24   : > { %s2841_s18 = smov (%p47_p5, %s2839_s18), 0  ;;  %s56_s7 = ssub.s32 %s2131_s23, %s54_s21 }
  0x25   : > { %2798 = sst [smem:[#allocation21_spill]] %s2841_s18  ;;  %p2150_p8 = por %p74_p7, %p73_p6 }
  0x26   : > { %s55_s9 = ssub.s32 %s2000_s12, %s2841_s18  ;;  %s222_s6 = smul.u32 %s1992_s10, %s1996_s11 }
  0x27   : > { %s57_s27 = sor.u32 %s56_s7, %s55_s9  ;;  %s223_s15 = smul.u32 %s2837_s17, %s2833_s16 }
  0x28   : > { %p58_p9 = scmp.eq.s32.totalorder %s57_s27, 0  ;;  %s229_s14 = sadd.s32 1, %s1964_s26 }
  0x29   : > { %s225_s5 = ssub.s32 %s222_s6, %s223_s15  ;;  %p239_p10 = scmp.ne.s32.totalorder %s1964_s26, %s1960_s25 }
  0x2a   : > { %s2164_s4 = scalar_select %p58_p9, %s1976_s29, %s60_s20  }
  0x2b   : > { %s226_s21 = sor.u32 %s225_s5, %s55_s9  ;;  %s2801_s2 = sadd.s32 4294967295, %s2004_s13  }
  0x2c   : > { %2800 = sst [smem:[#allocation22_spill]] %s2164_s4  ;;  %p240_p11 = scmp.eq.s32.totalorder %s2801_s2, 15 }
  0x2d   : > { %p227_p12 = scmp.eq.s32.totalorder %s226_s21, 0  ;;  %p245_p13 = scmp.ne.s32.totalorder %s1960_s25, %s1956_s24 }
  0x2e   : > { %p2170_p0 = por %p240_p11, %p239_p10  ;;  %s2803_s7 = sadd.s32 4294967294, %s2004_s13  }
  0x2f   : > { %p246_p1 = scmp.eq.s32.totalorder %s2803_s7, 15  ;;  %p1685_p3 = scmp.lt.s32.totalorder %s2004_s13, 16 }
  0x30   : > { %s2177_s27 = scalar_select %p227_p12, %s1964_s26, %s229_s14  }
  0x31   : > { %p2179_p2 = por %p246_p1, %p245_p13  ;;  %s2185_s6 = sand.u32 1, %s1976_s29  }
  0x32   : > { %s1368_s2 = sshll.u32 %s2185_s6, 8  ;;  %s1369_s5 = sshll.u32 %s2131_s23, 5 }
  0x33   : > { %s1370_s9 = sshll.u32 %s2000_s12, 7  ;;  %s285_s20 = scalar_lea.vmem [#allocation5], %s1368_s2 }
  0x34   : > { %s298_s15 = sshll.u32 %s285_s20, 4  ;;  %s293_s21 = sadd.s32 %s1370_s9, %s1369_s5  ;;  %s299_s15 = int_to_ptr.vmem [resolvable:$true] %s298_s15 }
  0x35   : > { %s1371_s14 = sshll.u32 %s293_s21, 3  ;;  %p2194_p5 = pnand %p1685_p3, %p2138_p4 }
  0x36   : > { %s2806_s0 = sld [smem:[#allocation23_spill]]  ;;  %s282_s23 = scalar_lea.sflag [#allocation6], %s2185_s6 }
  0x37   : > { %p1806_p7 = pneg %p2194_p5 }
  0x3c   : > { %s295_s10 = scalar_lea.hbm %s2806_s0, %s1371_s14  ;;  %s1809_s11 = scalar_lea.hbm %s2806_s0, 2048 }
  0x3d   : > { %s296_s4 = sshll.u32 %s295_s10, 4  ;;  %s297_s4 = int_to_ptr.hbm [resolvable:$true] %s296_s4 }
  0x3e   : > { %s1802_s12 = sshra.s32 %s297_s4, 4  ;;  %s1803_s12 = int_to_ptr.hbm [resolvable:$true] %s1802_s12 }
  0x3f   : > { %s1804_s20 = scalar_lea.hbm %s1803_s12, 256 }
  0x40   : > { %p1805_p6 = scmp.ne.s32.totalorder %s1803_s12, %s1804_s20  ;;  %p1811_p10 = scmp.lt.s32.totalorder %s1809_s11, %s1804_s20 }
  0x42   : > { %p1807_p4 = pnand %p1806_p7, %p1805_p6 }
  0x44   : > { %p1808_p9 = pneg %p1807_p4 }
  0x46   : > { %p1813_p11 = pnand %p1811_p10, %p1808_p9 }
  0x48   : > { %1816 = shalt.err (!%p1813_p11)
}
  0x49   : > { %s2006_s10 = smov 128   ;;  %s2007_s12 = smov 8  }
  0x4a   : > { %1677 = dma.hbm_to_vmem [thread:$0]  (!%p2194_p5), %s297_s4, 4096, %s299_s15, %s282_s23, %s2006_s10, %s2006_s10, %s2007_s12  }
  0x4b   : > { %p1376_p12 = scmp.ge.s32.totalorder %s2004_s13, 1  ;;  %p333_p13 = scmp.lt.s32.totalorder %s2004_s13, 17 }
  0x4c   : > { %s2808_s1 = sld [smem:[#allocation24_spill]]  ;;  %s312_s5 = scalar_lea.vmem [#allocation8], %s1368_s2 }
  0x4d   : > { %p2214_p1 = pnand %p1376_p12, %p333_p13  ;;  %s325_s11 = sshll.u32 %s312_s5, 4  ;;  %s326_s11 = int_to_ptr.vmem [resolvable:$true] %s325_s11 }
  0x4e   : > { %s309_s0 = scalar_lea.sflag [#allocation9], %s2185_s6 }
  0x52   : > { %s322_s20 = scalar_lea.hbm %s2808_s1, %s1371_s14  ;;  %s1839_s9 = scalar_lea.hbm %s2808_s1, 2048 }
  0x53   : > { %s323_s19 = sshll.u32 %s322_s20, 4  ;;  %s324_s19 = int_to_ptr.hbm [resolvable:$true] %s323_s19 }
  0x54   : > { %s1832_s29 = sshra.s32 %s324_s19, 4  ;;  %s1833_s29 = int_to_ptr.hbm [resolvable:$true] %s1832_s29 }
  0x55   : > { %s1834_s4 = scalar_lea.hbm %s1833_s29, 256 }
  0x56   : > { %p1835_p3 = scmp.ne.s32.totalorder %s1833_s29, %s1834_s4  ;;  %p1841_p9 = scmp.lt.s32.totalorder %s1839_s9, %s1834_s4 }
  0x58   : > { %p1837_p6 = pnand %p1835_p3, %p1806_p7 }
  0x5a   : > { %p1838_p4 = pneg %p1837_p6 }
  0x5c   : > { %p1843_p10 = pnand %p1841_p9, %p1838_p4 }
  0x5e   : > { %1846 = shalt.err (!%p1843_p10)
}
  0x5f   : > { %1680 = dma.hbm_to_vmem [thread:$0]  (!%p2194_p5), %s324_s19, 4096, %s326_s11, %s309_s0, %s2006_s10, %s2006_s10, %s2007_s12  }
  0x60   : > { %337 = sbr.rel (%p2214_p1) target bundleno = 843 (0x34b), region = 48  ;;  %s339_s29 = sand.u32 (!%p2214_p1), 1, %s1972_s28  }
  0x61   : > { %s1377_s6 = sshll.u32 (!%p2214_p1), %s339_s29, 8  ;;  %s340_s2 = scalar_lea.sflag (!%p2214_p1), [#allocation6], %s339_s29 }
  0x62   : > { %s2235_s14 = scalar_lea.vmem (!%p2214_p1), [#allocation5], %s1377_s6 }
  0x65   : > { %1943 = dma.done.wait (%p2150_p8), %s340_s2, 4096  }
  0x66   : > { %1945 = vsyncadd (%p2150_p8), %s340_s2, 4294963200  ;;  %s350_s21 = scalar_lea.sflag [#allocation9], %s339_s29  ;;  %s2241_s20 = scalar_lea.vmem [#allocation8], %s1377_s6 }
  0x67   : > { %1947 = dma.done.wait (%p2150_p8), %s350_s21, 4096  }
  0x68   : > { %1949 = vsyncadd (%p2150_p8), %s350_s21, 4294963200  ;;  %s387_s0 = sand.u32 1, %s1960_s25   ;;  %p1380_p5 = scmp.ne.s32.totalorder %s1984_s8, 0 }
  0x69   : > { %s1379_s7 = sshll.u32 %s387_s0, 8  ;;  %p1381_p7 = scmp.ne.s32.totalorder (!%p1380_p5), %s1980_s30, 0 }
  0x6a   : > { %s2250_s10 = scalar_lea.vmem [#allocation10], %s1379_s7  ;;  %403 = sbr.rel (%p1380_p5) target bundleno = 775 (0x307), region = 60 }
  0x6f   : > { %407 = sbr.rel (%p1381_p7) target bundleno = 118 (0x76), region = 64 }
  0x74   : > { %v2008_v0 = vmov 0.0  }
  0x75   : > { %408 = vst [vmem:[#allocation3] sm:$0x1] %v2008_v0 }
  0x76 PF: > { %s2809_s3 = sld [smem:[#allocation26_spill]]  ;;  %v473_v17 = vld [vmem:[%s2241_s20] sm:$0xff]  ;;  %v474_v18 = vld [vmem:[%s2241_s20 + $0x8] sm:$0xff]  ;;  %v475_v29 = vld [vmem:[%s2241_s20 + $0x10] sm:$0xff]  ;;  %p1448_p8 = scmp.ne.s32.totalorder %s1980_s30, 3 }
  0x77   : > { %s2810_s5 = sld [smem:[#allocation25_spill]]  ;;  %v409_v19 = vld [vmem:[%s2235_s14] sm:$0xff]  ;;  %v410_v20 = vld [vmem:[%s2235_s14 + $0x8] sm:$0xff]  ;;  %v505_v25 = vpack.c.bf16 %v474_v18, %v473_v17  ;;  %v476_v30 = vld [vmem:[%s2241_s20 + $0x18] sm:$0xff] }
  0x78   : > { %v489_v21 = vld [vmem:[%s2241_s20 + $0x80] sm:$0xff]  ;;  %v490_v22 = vld [vmem:[%s2241_s20 + $0x88] sm:$0xff]  ;;  %v441_v26 = vpack.c.bf16 %v410_v20, %v409_v19  ;;  %v411_v31 = vld [vmem:[%s2235_s14 + $0x10] sm:$0xff]  ;;  %v506_v37 = vpack.c.bf16 %v476_v30, %v475_v29  ;;  %s2811_s15 = sld [smem:[#allocation27_spill]] }
  0x79   : > { %v425_v23 = vld [vmem:[%s2235_s14 + $0x80] sm:$0xff]  ;;  %v426_v24 = vld [vmem:[%s2235_s14 + $0x88] sm:$0xff]  ;;  %v513_v27 = vpack.c.bf16 %v490_v22, %v489_v21  ;;  %v412_v32 = vld [vmem:[%s2235_s14 + $0x18] sm:$0xff]  ;;  %s2812_s29 = sld [smem:[#allocation28_spill]] (!%p1448_p8) }
  0x7a   : > { %v449_v28 = vpack.c.bf16 %v426_v24, %v425_v23  ;;  %v491_v33 = vld [vmem:[%s2241_s20 + $0x90] sm:$0xff]  ;;  %v492_v34 = vld [vmem:[%s2241_s20 + $0x98] sm:$0xff]  ;;  %v442_v38 = vpack.c.bf16 %v412_v32, %v411_v31  ;;  %v477_v41 = vld [vmem:[%s2241_s20 + $0x20] sm:$0xff]  ;;  %s2814_s4 = sld [smem:[#allocation29_spill]] (!%p1448_p8) }
  0x7b   : > { %v427_v35 = vld [vmem:[%s2235_s14 + $0x90] sm:$0xff]  ;;  %v428_v36 = vld [vmem:[%s2235_s14 + $0x98] sm:$0xff]  ;;  %v514_v39 = vpack.c.bf16 %v492_v34, %v491_v33  ;;  %v478_v42 = vld [vmem:[%s2241_s20 + $0x28] sm:$0xff] }
  0x7c   : > { %v1475_v1 = vld [vmem:[%s2809_s3 + $0x38] sm:$0xff]  ;;  %v1474_v3 = vld [vmem:[%s2809_s3 + $0x30] sm:$0xff]  ;;  %v1473_v5 = vld [vmem:[%s2809_s3 + $0x28] sm:$0xff]  ;;  %v450_v40 = vpack.c.bf16 %v428_v36, %v427_v35  ;;  %v507_v49 = vpack.c.bf16 %v478_v42, %v477_v41 }
  0x7d   : > { %v1467_v2 = vld [vmem:[%s2810_s5 + $0x38] sm:$0xff]  ;;  %585 = vmatpush.bf16.msra.mxu0 %v1475_v1  ;;  %v1466_v4 = vld [vmem:[%s2810_s5 + $0x30] sm:$0xff]  ;;  %1652 = vmatpush.bf16.msra.mxu2 %v1475_v1  ;;  %v1465_v6 = vld [vmem:[%s2810_s5 + $0x28] sm:$0xff] }
  0x7e   : > { %722 = vmatpush.bf16.msra.mxu1 %v1467_v2  ;;  %1660 = vmatpush.bf16.msra.mxu3 %v1467_v2  ;;  %v1472_v7 = vld [vmem:[%s2809_s3 + $0x20] sm:$0xff]  ;;  %v1471_v9 = vld [vmem:[%s2809_s3 + $0x18] sm:$0xff]  ;;  %v1470_v11 = vld [vmem:[%s2809_s3 + $0x10] sm:$0xff] }
  0x7f   : > { %v1464_v8 = vld [vmem:[%s2810_s5 + $0x20] sm:$0xff]  ;;  %v1463_v10 = vld [vmem:[%s2810_s5 + $0x18] sm:$0xff]  ;;  %v1462_v12 = vld [vmem:[%s2810_s5 + $0x10] sm:$0xff]  ;;  %s2813_s6 = smov (!%p1448_p8), %s2812_s29 }
  0x80   : > { %v1469_v13 = vld [vmem:[%s2809_s3 + $0x8] sm:$0xff]  ;;  %v1468_v15 = vld [vmem:[%s2809_s3] sm:$0xff]  ;;  %v479_v53 = vld [vmem:[%s2241_s20 + $0x30] sm:$0xff] }
  0x81   : > { %586 = vmatpush.bf16.msra.mxu0 %v1474_v3  ;;  %1653 = vmatpush.bf16.msra.mxu2 %v1474_v3  ;;  %v1461_v14 = vld [vmem:[%s2810_s5 + $0x8] sm:$0xff]  ;;  %v1460_v16 = vld [vmem:[%s2810_s5] sm:$0xff]  ;;  %v415_v55 = vld [vmem:[%s2235_s14 + $0x30] sm:$0xff] }
  0x82   : > { %723 = vmatpush.bf16.msra.mxu1 %v1466_v4  ;;  %1661 = vmatpush.bf16.msra.mxu3 %v1466_v4  ;;  %v413_v43 = vld [vmem:[%s2235_s14 + $0x20] sm:$0xff]  ;;  %v414_v44 = vld [vmem:[%s2235_s14 + $0x28] sm:$0xff]  ;;  %v480_v54 = vld [vmem:[%s2241_s20 + $0x38] sm:$0xff] }
  0x83   : > { %v493_v45 = vld [vmem:[%s2241_s20 + $0xa0] sm:$0xff]  ;;  %v494_v46 = vld [vmem:[%s2241_s20 + $0xa8] sm:$0xff]  ;;  %v443_v50 = vpack.c.bf16 %v414_v44, %v413_v43  ;;  %v416_v56 = vld [vmem:[%s2235_s14 + $0x38] sm:$0xff]  ;;  %v508_v61 = vpack.c.bf16 %v480_v54, %v479_v53 }
  0x84   : > { %v429_v47 = vld [vmem:[%s2235_s14 + $0xa0] sm:$0xff]  ;;  %v430_v48 = vld [vmem:[%s2235_s14 + $0xa8] sm:$0xff]  ;;  %v515_v51 = vpack.c.bf16 %v494_v46, %v493_v45  ;;  %v495_v57 = vld [vmem:[%s2241_s20 + $0xb0] sm:$0xff]  ;;  %v444_v62 = vpack.c.bf16 %v416_v56, %v415_v55 }
  0x85   : > { %587 = vmatpush.bf16.msra.mxu0 %v1473_v5  ;;  %1654 = vmatpush.bf16.msra.mxu2 %v1473_v5  ;;  %v451_v52 = vpack.c.bf16 %v430_v48, %v429_v47  ;;  %v496_v58 = vld [vmem:[%s2241_s20 + $0xb8] sm:$0xff]  ;;  %v431_v59 = vld [vmem:[%s2235_s14 + $0xb0] sm:$0xff]  ;;  %v481_v1 = vld [vmem:[%s2241_s20 + $0x40] sm:$0xff] }
  0x86   : > { %724 = vmatpush.bf16.msra.mxu1 %v1465_v6  ;;  %1662 = vmatpush.bf16.msra.mxu3 %v1465_v6  ;;  %v432_v60 = vld [vmem:[%s2235_s14 + $0xb8] sm:$0xff]  ;;  %v516_v63 = vpack.c.bf16 %v496_v58, %v495_v57  ;;  %v482_v2 = vld [vmem:[%s2241_s20 + $0x48] sm:$0xff]  ;;  %v417_v3 = vld [vmem:[%s2235_s14 + $0x40] sm:$0xff] }
  0x87   : > { %v452_v0 = vpack.c.bf16 %v432_v60, %v431_v59  ;;  %v418_v4 = vld [vmem:[%s2235_s14 + $0x48] sm:$0xff]  ;;  %v497_v5 = vld [vmem:[%s2241_s20 + $0xc0] sm:$0xff]  ;;  %v499_v17 = vld [vmem:[%s2241_s20 + $0xd0] sm:$0xff] }
  0x88   : > { %v498_v6 = vld [vmem:[%s2241_s20 + $0xc8] sm:$0xff]  ;;  %v500_v18 = vld [vmem:[%s2241_s20 + $0xd8] sm:$0xff]  ;;  %v435_v19 = vld [vmem:[%s2235_s14 + $0xd0] sm:$0xff] }
  0x89   : > { %588 = vmatpush.bf16.msra.mxu0 %v1472_v7  ;;  %1655 = vmatpush.bf16.msra.mxu2 %v1472_v7  ;;  %v433_v7 = vld [vmem:[%s2235_s14 + $0xc0] sm:$0xff]  ;;  %v436_v20 = vld [vmem:[%s2235_s14 + $0xd8] sm:$0xff]  ;;  %v518_v23 = vpack.c.bf16 %v500_v18, %v499_v17  ;;  %v502_v30 = vld [vmem:[%s2241_s20 + $0xe8] sm:$0xff] }
  0x8a   : > { %725 = vmatpush.bf16.msra.mxu1 %v1464_v8  ;;  %1663 = vmatpush.bf16.msra.mxu3 %v1464_v8  ;;  %v434_v8 = vld [vmem:[%s2235_s14 + $0xc8] sm:$0xff]  ;;  %v454_v24 = vpack.c.bf16 %v436_v20, %v435_v19  ;;  %v501_v29 = vld [vmem:[%s2241_s20 + $0xe0] sm:$0xff]  ;;  %v503_v41 = vld [vmem:[%s2241_s20 + $0xf0] sm:$0xff] }
  0x8b   : > { %v437_v31 = vld [vmem:[%s2235_s14 + $0xe0] sm:$0xff]  ;;  %v438_v32 = vld [vmem:[%s2235_s14 + $0xe8] sm:$0xff]  ;;  %v519_v35 = vpack.c.bf16 %v502_v30, %v501_v29  ;;  %v504_v42 = vld [vmem:[%s2241_s20 + $0xf8] sm:$0xff] }
  0x8c   : > { %v455_v36 = vpack.c.bf16 %v438_v32, %v437_v31  ;;  %v439_v43 = vld [vmem:[%s2235_s14 + $0xf0] sm:$0xff]  ;;  %v440_v44 = vld [vmem:[%s2235_s14 + $0xf8] sm:$0xff]  ;;  %v520_v47 = vpack.c.bf16 %v504_v42, %v503_v41 }
  0x8d   : > { %589 = vmatpush.bf16.msra.mxu0 %v1471_v9  ;;  %1656 = vmatpush.bf16.msra.mxu2 %v1471_v9  ;;  %v509_v9 = vpack.c.bf16 %v482_v2, %v481_v1  ;;  %v456_v48 = vpack.c.bf16 %v440_v44, %v439_v43 }
  0x8e   : > { %726 = vmatpush.bf16.msra.mxu1 %v1463_v10  ;;  %1664 = vmatpush.bf16.msra.mxu3 %v1463_v10  ;;  %v445_v10 = vpack.c.bf16 %v418_v4, %v417_v3 }
  0x91   : > { %590 = vmatpush.bf16.msra.mxu0 %v1470_v11  ;;  %1657 = vmatpush.bf16.msra.mxu2 %v1470_v11  ;;  %v517_v11 = vpack.c.bf16 %v498_v6, %v497_v5 }
  0x92   : > { %727 = vmatpush.bf16.msra.mxu1 %v1462_v12  ;;  %1665 = vmatpush.bf16.msra.mxu3 %v1462_v12  ;;  %v453_v12 = vpack.c.bf16 %v434_v8, %v433_v7 }
  0x95   : > { %591 = vmatpush.bf16.msra.mxu0 %v1469_v13  ;;  %1658 = vmatpush.bf16.msra.mxu2 %v1469_v13  ;;  %v483_v13 = vld [vmem:[%s2241_s20 + $0x50] sm:$0xff] }
  0x96   : > { %728 = vmatpush.bf16.msra.mxu1 %v1461_v14  ;;  %1666 = vmatpush.bf16.msra.mxu3 %v1461_v14  ;;  %v484_v14 = vld [vmem:[%s2241_s20 + $0x58] sm:$0xff] }
  0x97   : > { %v510_v21 = vpack.c.bf16 %v484_v14, %v483_v13 }
  0x99   : > { %592 = vmatpush.bf16.msra.mxu0 %v1468_v15  ;;  %1659 = vmatpush.bf16.msra.mxu2 %v1468_v15  ;;  %v419_v15 = vld [vmem:[%s2235_s14 + $0x50] sm:$0xff] }
  0x9a   : > { %729 = vmatpush.bf16.msra.mxu1 %v1460_v16  ;;  %1667 = vmatpush.bf16.msra.mxu3 %v1460_v16  ;;  %v420_v16 = vld [vmem:[%s2235_s14 + $0x58] sm:$0xff] }
  0x9b   : > { %v446_v22 = vpack.c.bf16 %v420_v16, %v419_v15 }
  0x9c   : > { %593 = vmatmul.bf16.vlgmr.msra.gmra.mxu0 %v505_v25  ;;  %633 = vmatmul.bf16.vlgmr.msra.gmra.mxu2 %v513_v27  ;;  %v485_v25 = vld [vmem:[%s2241_s20 + $0x60] sm:$0xff] }
  0x9d   : > { %730 = vmatmul.bf16.vlgmr.msra.gmra.mxu1 %v441_v26  ;;  %770 = vmatmul.bf16.vlgmr.msra.gmra.mxu3 %v449_v28  ;;  %v486_v26 = vld [vmem:[%s2241_s20 + $0x68] sm:$0xff]  ;;  %v421_v27 = vld [vmem:[%s2235_s14 + $0x60] sm:$0xff] }
  0x9e   : > { %v422_v28 = vld [vmem:[%s2235_s14 + $0x68] sm:$0xff]  ;;  %v511_v33 = vpack.c.bf16 %v486_v26, %v485_v25 }
  0x9f   : > { %v447_v34 = vpack.c.bf16 %v422_v28, %v421_v27 }
  0xac   : > { %598 = vmatmul.bf16.gmra.mxu0 %v506_v37  ;;  %638 = vmatmul.bf16.gmra.mxu2 %v514_v39  ;;  %v487_v37 = vld [vmem:[%s2241_s20 + $0x70] sm:$0xff] }
  0xad   : > { %735 = vmatmul.bf16.gmra.mxu1 %v442_v38  ;;  %775 = vmatmul.bf16.gmra.mxu3 %v450_v40  ;;  %v488_v38 = vld [vmem:[%s2241_s20 + $0x78] sm:$0xff]  ;;  %v423_v39 = vld [vmem:[%s2235_s14 + $0x70] sm:$0xff] }
  0xae   : > { %v424_v40 = vld [vmem:[%s2235_s14 + $0x78] sm:$0xff]  ;;  %v512_v45 = vpack.c.bf16 %v488_v38, %v487_v37  ;;  %s1476_s14 = sshll.u32 %s1980_s30, 7 }
  0xaf   : > { %v448_v46 = vpack.c.bf16 %v424_v40, %v423_v39  ;;  %s2377_s20 = scalar_lea.vmem [#allocation2], %s1476_s14 }
  0xbc   : > { %603 = vmatmul.bf16.gmra.mxu0 %v507_v49  ;;  %643 = vmatmul.bf16.gmra.mxu2 %v515_v51 }
  0xbd   : > { %740 = vmatmul.bf16.gmra.mxu1 %v443_v50  ;;  %780 = vmatmul.bf16.gmra.mxu3 %v451_v52  ;;  %v2369_v52 = vld [vmem:[%s2811_s15] ss:$0 sm:$0xff] }
  0xcc   : > { %608 = vmatmul.bf16.gmra.mxu0 %v508_v61  ;;  %648 = vmatmul.bf16.gmra.mxu2 %v516_v63 }
  0xcd   : > { %745 = vmatmul.bf16.gmra.mxu1 %v444_v62  ;;  %785 = vmatmul.bf16.gmra.mxu3 %v452_v0 }
  0xdc   : > { %613 = vmatmul.bf16.gmra.mxu0 %v509_v9  ;;  %653 = vmatmul.bf16.gmra.mxu2 %v517_v11 }
  0xdd   : > { %750 = vmatmul.bf16.gmra.mxu1 %v445_v10  ;;  %790 = vmatmul.bf16.gmra.mxu3 %v453_v12 }
  0xec   : > { %618 = vmatmul.bf16.gmra.mxu0 %v510_v21  ;;  %658 = vmatmul.bf16.gmra.mxu2 %v518_v23 }
  0xed   : > { %755 = vmatmul.bf16.gmra.mxu1 %v446_v22  ;;  %795 = vmatmul.bf16.gmra.mxu3 %v454_v24 }
  0xfc   : > { %623 = vmatmul.bf16.gmra.mxu0 %v511_v33  ;;  %663 = vmatmul.bf16.gmra.mxu2 %v519_v35 }
  0xfd   : > { %760 = vmatmul.bf16.gmra.mxu1 %v447_v34  ;;  %800 = vmatmul.bf16.gmra.mxu3 %v455_v36 }
 0x10c   : > { %628 = vmatmul.bf16.gmra.mxu0 %v512_v45  ;;  %668 = vmatmul.bf16.gmra.mxu2 %v520_v47 }
 0x10d   : > { %765 = vmatmul.bf16.gmra.mxu1 %v448_v46  ;;  %805 = vmatmul.bf16.gmra.mxu3 %v456_v48 }
 0x119   : > { %v594_v49 = vpop.f32.mrf.mxu0 }
 0x11a   : > { %v731_v50 = vpop.f32.mrf.mxu1 }
 0x11b   : > { %v732_v51 = vadd.f32 %v731_v50, %v594_v49 }
 0x11d   : > { %v815_v57 = vadd.f32 %v2369_v52, %v732_v51 }
 0x11f   : > { %v634_v53 = vpop.f32.mrf.mxu2  ;;  %v847_v61 = vmax.f32 %v815_v57, 0.0 }
 0x120   : > { %v771_v54 = vpop.f32.mrf.mxu3 }
 0x121   : > { %v596_v55 = vpop.f32.mrf.mxu0  ;;  %v772_v59 = vadd.f32 %v771_v54, %v634_v53 }
 0x122   : > { %v733_v56 = vpop.f32.mrf.mxu1 }
 0x123   : > { %v734_v58 = vadd.f32 %v733_v56, %v596_v55  ;;  %v2375_v63 = vadd.f32 %v2369_v52, %v772_v59 }
 0x125   : > { %v816_v60 = vadd.f32 %v2369_v52, %v734_v58  ;;  %v863_v8 = vmax.f32 %v2375_v63, 0.0 }
 0x127   : > { %v848_v62 = vmax.f32 %v816_v60, 0.0  ;;  %v636_v2 = vpop.f32.mrf.mxu2 }
 0x128   : > { %v773_v3 = vpop.f32.mrf.mxu3 }
 0x129   : > { %v1481_v0 = vpack.c.bf16 %v848_v62, %v847_v61  ;;  %v947_v1 = vadd.f32 %v848_v62, %v847_v61  ;;  %v599_v4 = vpop.f32.mrf.mxu0  ;;  %v774_v6 = vadd.f32 %v773_v3, %v636_v2 }
 0x12a   : > { %v736_v5 = vpop.f32.mrf.mxu1 }
 0x12b   : > { %1482 = vst [vmem:[%s2377_s20] sm:$0xff] %v1481_v0   ;;  %v737_v7 = vadd.f32 %v736_v5, %v599_v4  ;;  %v2382_v9 = vadd.f32 %v2369_v52, %v774_v6 }
 0x12d   : > { %v817_v10 = vadd.f32 %v2369_v52, %v737_v7  ;;  %v864_v11 = vmax.f32 %v2382_v9, 0.0 }
 0x12f   : > { %v849_v12 = vmax.f32 %v817_v10, 0.0  ;;  %v1521_v13 = vpack.c.bf16 %v864_v11, %v863_v8  ;;  %v639_v15 = vpop.f32.mrf.mxu2 }
 0x130   : > { %v776_v16 = vpop.f32.mrf.mxu3 }
 0x131   : > { %v948_v14 = vadd.f32 %v947_v1, %v849_v12  ;;  %v601_v17 = vpop.f32.mrf.mxu0  ;;  %1629 = vst [vmem:[%s2377_s20 + $0x40] sm:$0xff] %v1521_v13   ;;  %v777_v20 = vadd.f32 %v776_v16, %v639_v15 }
 0x132   : > { %v738_v18 = vpop.f32.mrf.mxu1 }
 0x133   : > { %v739_v19 = vadd.f32 %v738_v18, %v601_v17  ;;  %v2393_v23 = vadd.f32 %v2369_v52, %v777_v20 }
 0x135   : > { %v818_v21 = vadd.f32 %v2369_v52, %v739_v19  ;;  %v865_v31 = vmax.f32 %v2393_v23, 0.0 }
 0x137   : > { %v850_v22 = vmax.f32 %v818_v21, 0.0  ;;  %v641_v26 = vpop.f32.mrf.mxu2 }
 0x138   : > { %v778_v27 = vpop.f32.mrf.mxu3 }
 0x139   : > { %v1486_v24 = vpack.c.bf16 %v850_v22, %v849_v12  ;;  %v2395_v25 = vadd.f32 %v948_v14, %v850_v22  ;;  %v604_v28 = vpop.f32.mrf.mxu0  ;;  %v779_v30 = vadd.f32 %v778_v27, %v641_v26 }
 0x13a   : > { %v741_v29 = vpop.f32.mrf.mxu1 }
 0x13b   : > { %1622 = vst [vmem:[%s2377_s20 + $0x8] sm:$0xff] %v1486_v24   ;;  %v2400_v32 = vadd.f32 %v2369_v52, %v779_v30  ;;  %v742_v34 = vadd.f32 %v741_v29, %v604_v28 }
 0x13d   : > { %v866_v33 = vmax.f32 %v2400_v32, 0.0  ;;  %v2409_v40 = vadd.f32 %v2369_v52, %v742_v34 }
 0x13f   : > { %v1526_v35 = vpack.c.bf16 %v866_v33, %v865_v31  ;;  %v644_v36 = vpop.f32.mrf.mxu2  ;;  %v851_v44 = vmax.f32 %v2409_v40, 0.0 }
 0x140   : > { %v781_v37 = vpop.f32.mrf.mxu3 }
 0x141   : > { %v606_v38 = vpop.f32.mrf.mxu0  ;;  %1630 = vst [vmem:[%s2377_s20 + $0x48] sm:$0xff] %v1526_v35   ;;  %v782_v42 = vadd.f32 %v781_v37, %v644_v36 }
 0x142   : > { %v743_v39 = vpop.f32.mrf.mxu1 }
 0x143   : > { %v744_v41 = vadd.f32 %v743_v39, %v606_v38  ;;  %v2417_v46 = vadd.f32 %v2369_v52, %v782_v42 }
 0x145   : > { %v2412_v43 = vadd.f32 %v2369_v52, %v744_v41  ;;  %v867_v54 = vmax.f32 %v2417_v46, 0.0 }
 0x147   : > { %v852_v45 = vmax.f32 %v2412_v43, 0.0  ;;  %v646_v48 = vpop.f32.mrf.mxu2 }
 0x148   : > { %v783_v49 = vpop.f32.mrf.mxu3 }
 0x149   : > { %v1491_v47 = vpack.c.bf16 %v852_v45, %v851_v44  ;;  %v609_v50 = vpop.f32.mrf.mxu0  ;;  %v784_v53 = vadd.f32 %v783_v49, %v646_v48 }
 0x14a   : > { %v746_v51 = vpop.f32.mrf.mxu1 }
 0x14b   : > { %1623 = vst [vmem:[%s2377_s20 + $0x10] sm:$0xff] %v1491_v47   ;;  %v2426_v55 = vadd.f32 %v2369_v52, %v784_v53  ;;  %v747_v57 = vadd.f32 %v746_v51, %v609_v50 }
 0x14d   : > { %v868_v56 = vmax.f32 %v2426_v55, 0.0  ;;  %v2435_v0 = vadd.f32 %v2369_v52, %v747_v57 }
 0x14f   : > { %v1531_v58 = vpack.c.bf16 %v868_v56, %v867_v54  ;;  %v649_v59 = vpop.f32.mrf.mxu2  ;;  %v853_v4 = vmax.f32 %v2435_v0, 0.0 }
 0x150   : > { %v786_v60 = vpop.f32.mrf.mxu3 }
 0x151   : > { %v611_v61 = vpop.f32.mrf.mxu0  ;;  %1631 = vst [vmem:[%s2377_s20 + $0x50] sm:$0xff] %v1531_v58   ;;  %v787_v2 = vadd.f32 %v786_v60, %v649_v59 }
 0x152   : > { %v748_v62 = vpop.f32.mrf.mxu1 }
 0x153   : > { %v749_v1 = vadd.f32 %v748_v62, %v611_v61  ;;  %v2443_v6 = vadd.f32 %v2369_v52, %v787_v2 }
 0x155   : > { %v2438_v3 = vadd.f32 %v2369_v52, %v749_v1  ;;  %v869_v16 = vmax.f32 %v2443_v6, 0.0 }
 0x157   : > { %v854_v5 = vmax.f32 %v2438_v3, 0.0  ;;  %v651_v10 = vpop.f32.mrf.mxu2 }
 0x158   : > { %v788_v12 = vpop.f32.mrf.mxu3 }
 0x159   : > { %v1496_v7 = vpack.c.bf16 %v854_v5, %v853_v4  ;;  %v614_v13 = vpop.f32.mrf.mxu0  ;;  %v789_v15 = vadd.f32 %v788_v12, %v651_v10 }
 0x15a   : > { %v751_v14 = vpop.f32.mrf.mxu1 }
 0x15b   : > { %1624 = vst [vmem:[%s2377_s20 + $0x18] sm:$0xff] %v1496_v7   ;;  %v2452_v17 = vadd.f32 %v2369_v52, %v789_v15  ;;  %v752_v19 = vadd.f32 %v751_v14, %v614_v13 }
 0x15d   : > { %v870_v18 = vmax.f32 %v2452_v17, 0.0  ;;  %v2461_v27 = vadd.f32 %v2369_v52, %v752_v19 }
 0x15f   : > { %v1536_v20 = vpack.c.bf16 %v870_v18, %v869_v16  ;;  %v654_v21 = vpop.f32.mrf.mxu2  ;;  %v855_v34 = vmax.f32 %v2461_v27, 0.0 }
 0x160   : > { %v791_v22 = vpop.f32.mrf.mxu3 }
 0x161   : > { %v616_v24 = vpop.f32.mrf.mxu0  ;;  %1632 = vst [vmem:[%s2377_s20 + $0x58] sm:$0xff] %v1536_v20   ;;  %v792_v29 = vadd.f32 %v791_v22, %v654_v21 }
 0x162   : > { %v753_v26 = vpop.f32.mrf.mxu1 }
 0x163   : > { %v754_v28 = vadd.f32 %v753_v26, %v616_v24  ;;  %v2469_v36 = vadd.f32 %v2369_v52, %v792_v29 }
 0x165   : > { %v2464_v30 = vadd.f32 %v2369_v52, %v754_v28  ;;  %v871_v48 = vmax.f32 %v2469_v36, 0.0 }
 0x167   : > { %v856_v35 = vmax.f32 %v2464_v30, 0.0  ;;  %v656_v38 = vpop.f32.mrf.mxu2 }
 0x168   : > { %v793_v39 = vpop.f32.mrf.mxu3 }
 0x169   : > { %v1501_v37 = vpack.c.bf16 %v856_v35, %v855_v34  ;;  %v619_v41 = vpop.f32.mrf.mxu0  ;;  %v794_v47 = vadd.f32 %v793_v39, %v656_v38 }
 0x16a   : > { %v756_v42 = vpop.f32.mrf.mxu1 }
 0x16b   : > { %1625 = vst [vmem:[%s2377_s20 + $0x20] sm:$0xff] %v1501_v37   ;;  %v2476_v49 = vadd.f32 %v2369_v52, %v794_v47  ;;  %v757_v51 = vadd.f32 %v756_v42, %v619_v41  ;;  %v950_v41 = vadd.f32 %v2395_v25, %v851_v44 }
 0x16d   : > { %v872_v50 = vmax.f32 %v2476_v49, 0.0  ;;  %v825_v61 = vadd.f32 %v2369_v52, %v757_v51 }
 0x16f   : > { %v1541_v53 = vpack.c.bf16 %v872_v50, %v871_v48  ;;  %v659_v57 = vpop.f32.mrf.mxu2  ;;  %v857_v7 = vmax.f32 %v825_v61, 0.0 }
 0x170   : > { %v796_v58 = vpop.f32.mrf.mxu3 }
 0x171   : > { %v621_v59 = vpop.f32.mrf.mxu0  ;;  %1633 = vst [vmem:[%s2377_s20 + $0x60] sm:$0xff] %v1541_v53   ;;  %v797_v1 = vadd.f32 %v796_v58, %v659_v57  ;;  %v951_v53 = vadd.f32 %v950_v41, %v852_v45 }
 0x172   : > { %v758_v60 = vpop.f32.mrf.mxu1 }
 0x173   : > { %v759_v62 = vadd.f32 %v758_v60, %v621_v59  ;;  %v2487_v12 = vadd.f32 %v2369_v52, %v797_v1  ;;  %v952_v58 = vadd.f32 %v951_v53, %v853_v4 }
 0x175   : > { %v826_v2 = vadd.f32 %v2369_v52, %v759_v62  ;;  %v873_v22 = vmax.f32 %v2487_v12, 0.0  ;;  %v953_v25 = vadd.f32 %v952_v58, %v854_v5 }
 0x177   : > { %v858_v10 = vmax.f32 %v826_v2, 0.0  ;;  %v661_v14 = vpop.f32.mrf.mxu2  ;;  %v954_v43 = vadd.f32 %v953_v25, %v855_v34 }
 0x178   : > { %v798_v15 = vpop.f32.mrf.mxu3 }
 0x179   : > { %v1506_v13 = vpack.c.bf16 %v858_v10, %v857_v7  ;;  %v624_v19 = vpop.f32.mrf.mxu0  ;;  %v799_v21 = vadd.f32 %v798_v15, %v661_v14  ;;  %v955_v4 = vadd.f32 %v954_v43, %v856_v35 }
 0x17a   : > { %v761_v20 = vpop.f32.mrf.mxu1 }
 0x17b   : > { %1626 = vst [vmem:[%s2377_s20 + $0x28] sm:$0xff] %v1506_v13   ;;  %v2492_v24 = vadd.f32 %v2369_v52, %v799_v21  ;;  %v762_v27 = vadd.f32 %v761_v20, %v624_v19  ;;  %v956_v19 = vadd.f32 %v955_v4, %v857_v7 }
 0x17d   : > { %v874_v26 = vmax.f32 %v2492_v24, 0.0  ;;  %v827_v42 = vadd.f32 %v2369_v52, %v762_v27  ;;  %v957_v20 = vadd.f32 %v956_v19, %v858_v10 }
 0x17f   : > { %v1546_v28 = vpack.c.bf16 %v874_v26, %v873_v22  ;;  %v664_v29 = vpop.f32.mrf.mxu2  ;;  %v859_v59 = vmax.f32 %v827_v42, 0.0 }
 0x180   : > { %v801_v37 = vpop.f32.mrf.mxu3 }
 0x181   : > { %v626_v38 = vpop.f32.mrf.mxu0  ;;  %1634 = vst [vmem:[%s2377_s20 + $0x68] sm:$0xff] %v1546_v28   ;;  %v802_v51 = vadd.f32 %v801_v37, %v664_v29  ;;  %v958_v34 = vadd.f32 %v957_v20, %v859_v59 }
 0x182   : > { %v763_v39 = vpop.f32.mrf.mxu1 }
 0x183   : > { %v764_v47 = vadd.f32 %v763_v39, %v626_v38  ;;  %v843_v61 = vadd.f32 %v2369_v52, %v802_v51 }
 0x185   : > { %v828_v57 = vadd.f32 %v2369_v52, %v764_v47  ;;  %v875_v14 = vmax.f32 %v843_v61, 0.0 }
 0x187   : > { %v860_v60 = vmax.f32 %v828_v57, 0.0  ;;  %v666_v44 = vpop.f32.mrf.mxu2 }
 0x188   : > { %v803_v62 = vpop.f32.mrf.mxu3 }
 0x189   : > { %v1511_v40 = vpack.c.bf16 %v860_v60, %v859_v59  ;;  %v629_v1 = vpop.f32.mrf.mxu0  ;;  %v804_v13 = vadd.f32 %v803_v62, %v666_v44  ;;  %v959_v41 = vadd.f32 %v958_v34, %v860_v60 }
 0x18a   : > { %v766_v2 = vpop.f32.mrf.mxu1 }
 0x18b   : > { %1627 = vst [vmem:[%s2377_s20 + $0x30] sm:$0xff] %v1511_v40   ;;  %v767_v45 = vadd.f32 %v766_v2, %v629_v1  ;;  %v844_v0 = vadd.f32 %v2369_v52, %v804_v13 }
 0x18d   : > { %v876_v15 = vmax.f32 %v844_v0, 0.0  ;;  %v829_v3 = vadd.f32 %v2369_v52, %v767_v45 }
 0x18f   : > { %v1551_v5 = vpack.c.bf16 %v876_v15, %v875_v14  ;;  %v669_v21 = vpop.f32.mrf.mxu2  ;;  %v861_v37 = vmax.f32 %v829_v3, 0.0 }
 0x190   : > { %v806_v27 = vpop.f32.mrf.mxu3 }
 0x191   : > { %v631_v28 = vpop.f32.mrf.mxu0  ;;  %1635 = vst [vmem:[%s2377_s20 + $0x70] sm:$0xff] %v1551_v5   ;;  %v807_v39 = vadd.f32 %v806_v27, %v669_v21  ;;  %v960_v35 = vadd.f32 %v959_v41, %v861_v37 }
 0x192   : > { %v768_v29 = vpop.f32.mrf.mxu1 }
 0x193   : > { %v769_v38 = vadd.f32 %v768_v29, %v631_v28  ;;  %v845_v7 = vadd.f32 %v2369_v52, %v807_v39 }
 0x195   : > { %v830_v30 = vadd.f32 %v2369_v52, %v769_v38  ;;  %v877_v59 = vmax.f32 %v845_v7, 0.0 }
 0x197   : > { %v862_v42 = vmax.f32 %v830_v30, 0.0  ;;  %v671_v51 = vpop.f32.mrf.mxu2 }
 0x198   : > { %v808_v53 = vpop.f32.mrf.mxu3 }
 0x199   : > { %v1516_v47 = vpack.c.bf16 %v862_v42, %v861_v37  ;;  %v961_v10 = vadd.f32 %v960_v35, %v862_v42  ;;  %v809_v57 = vadd.f32 %v808_v53, %v671_v51 }
 0x19b   : > { %1628 = vst [vmem:[%s2377_s20 + $0x38] sm:$0xff] %v1516_v47   ;;  %v962_v58 = vadd.f32 %v961_v10, %v863_v8  ;;  %v846_v61 = vadd.f32 %v2369_v52, %v809_v57 }
 0x19d   : > { %v963_v60 = vadd.f32 %v962_v58, %v864_v11  ;;  %v878_v25 = vmax.f32 %v846_v61, 0.0 }
 0x19f   : > { %v964_v40 = vadd.f32 %v963_v60, %v865_v31  ;;  %v1556_v44 = vpack.c.bf16 %v878_v25, %v877_v59 }
 0x1a1   : > { %v965_v62 = vadd.f32 %v964_v40, %v866_v33  ;;  %1636 = vst [vmem:[%s2377_s20 + $0x78] sm:$0xff] %v1556_v44  }
 0x1a3   : > { %v966_v1 = vadd.f32 %v965_v62, %v867_v54 }
 0x1a5   : > { %v967_v63 = vadd.f32 %v966_v1, %v868_v56 }
 0x1a7   : > { %v968_v52 = vadd.f32 %v967_v63, %v869_v16 }
 0x1a9   : > { %v969_v8 = vadd.f32 %v968_v52, %v870_v18  ;;  %v946_v18 = vld [vmem:[#allocation3] sm:$0x1] }
 0x1ab   : > { %v970_v9 = vadd.f32 %v969_v8, %v871_v48 }
 0x1ad   : > { %v971_v11 = vadd.f32 %v970_v9, %v872_v50 }
 0x1af   : > { %v972_v23 = vadd.f32 %v971_v11, %v873_v22 }
 0x1b1   : > { %v973_v31 = vadd.f32 %v972_v23, %v874_v26 }
 0x1b3   : > { %v974_v32 = vadd.f32 %v973_v31, %v875_v14 }
 0x1b5   : > { %v975_v33 = vadd.f32 %v974_v32, %v876_v15 }
 0x1b7   : > { %v976_v46 = vadd.f32 %v975_v33, %v877_v59 }
 0x1b9   : > { %v977_v54 = vadd.f32 %v976_v46, %v878_v25 }
 0x1bb   : > { %v978_v55 = vrot.slane %v977_v54, 4 }
 0x1bd   : > { %v979_v56 = vadd.f32 %v978_v55, %v977_v54 }
 0x1bf   : > { %v980_v6 = vrot.slane %v979_v56, 2 }
 0x1c1   : > { %v981_v16 = vadd.f32 %v980_v6, %v979_v56 }
 0x1c3   : > { %v982_v17 = vrot.slane %v981_v16, 1 }
 0x1c5   : > { %v983_v36 = vadd.f32 %v982_v17, %v981_v16  ;;  %989 = sbr.rel (%p1448_p8) target bundleno = 775 (0x307), region = 68 }
 0x1c7   : > { %v984_v48 = vadd.f32 %v983_v36, %v946_v18 }
 0x1c9   : > { %985 = vst [vmem:[#allocation3] sm:$0x1] %v984_v48 }
 0x1ca   : > { %v1007_v49 = vld [vmem:[%s2812_s29 + $0x78] sm:$0xff]  ;;  %v1006_v50 = vld [vmem:[%s2813_s6 + $0x70] sm:$0xff]  ;;  %v1005_v12 = vld [vmem:[%s2813_s6 + $0x68] sm:$0xff]  ;;  %vm1033_vm0 = vcmask 261120  }
 0x1cb   : > { %1008 = vmatpush.msra.mxu0 %v1007_v49  ;;  %v1004_v22 = vld [vmem:[%s2813_s6 + $0x60] sm:$0xff]  ;;  %v1032_v24 = vld [vmem:[%s2814_s4 + $0x18] sm:$0xff]  ;;  %v1031_v2 = vld [vmem:[%s2814_s4 + $0x10] sm:$0xff] }
 0x1cc   : > { %v1003_v26 = vld [vmem:[%s2813_s6 + $0x58] sm:$0xff]  ;;  %1049 = vmatpush.msra.mxu1 %v1032_v24  ;;  %v1002_v13 = vld [vmem:[%s2813_s6 + $0x50] sm:$0xff]  ;;  %v1001_v43 = vld [vmem:[%s2813_s6 + $0x48] sm:$0xff] }
 0x1cd   : > { %1009 = vmatpush.msra.mxu0 %v1006_v50  ;;  %v1000_v45 = vld [vmem:[%s2813_s6 + $0x40] sm:$0xff]  ;;  %v999_v14 = vld [vmem:[%s2813_s6 + $0x38] sm:$0xff]  ;;  %v998_v0 = vld [vmem:[%s2813_s6 + $0x30] sm:$0xff] }
 0x1ce   : > { %1050 = vmatpush.msra.mxu1 %v1031_v2  ;;  %v997_v4 = vld [vmem:[%s2813_s6 + $0x28] sm:$0xff]  ;;  %v996_v15 = vld [vmem:[%s2813_s6 + $0x20] sm:$0xff]  ;;  %v995_v19 = vld [vmem:[%s2813_s6 + $0x18] sm:$0xff] }
 0x1cf   : > { %1010 = vmatpush.msra.mxu0 %v1005_v12  ;;  %v994_v3 = vld [vmem:[%s2813_s6 + $0x10] sm:$0xff]  ;;  %v993_v20 = vld [vmem:[%s2813_s6 + $0x8] sm:$0xff]  ;;  %v992_v21 = vld [vmem:[%s2813_s6] sm:$0xff] }
 0x1d0   : > { %v990_v5 = vld [vmem:[#allocation3] sm:$0x1]  ;;  %v1030_v28 = vld [vmem:[%s2814_s4 + $0x8] sm:$0xff] }
 0x1d1   : > { %1011 = vmatpush.msra.mxu0 %v1004_v22  ;;  %v991_v27 = vmul.f32 0.0009765625, %v990_v5  ;;  %1051 = vmatpush.msra.mxu1 %v1030_v28  ;;  %v1029_v29 = vld [vmem:[%s2814_s4] sm:$0xff] }
 0x1d3   : > { %1012 = vmatpush.msra.mxu0 %v1003_v26  ;;  %1052 = vmatpush.msra.mxu1 %v1029_v29 }
 0x1d5   : > { %1013 = vmatpush.msra.mxu0 %v1002_v13 }
 0x1d7   : > { %1014 = vmatpush.msra.mxu0 %v1001_v43 }
 0x1d9   : > { %1015 = vmatpush.msra.mxu0 %v1000_v45 }
 0x1db   : > { %1016 = vmatpush.msra.mxu0 %v999_v14 }
 0x1dd   : > { %1017 = vmatpush.msra.mxu0 %v998_v0 }
 0x1df   : > { %1018 = vmatpush.msra.mxu0 %v997_v4 }
 0x1e1   : > { %1019 = vmatpush.msra.mxu0 %v996_v15 }
 0x1e3   : > { %1020 = vmatpush.msra.mxu0 %v995_v19 }
 0x1e5   : > { %1021 = vmatpush.msra.mxu0 %v994_v3 }
 0x1e7   : > { %1022 = vmatpush.msra.mxu0 %v993_v20 }
 0x1e9   : > { %1023 = vmatpush.msra.mxu0 %v992_v21 }
 0x1ea   : > { %1024 = vmatmul.f32.vlgmr.msra.gmra.mxu0 %v991_v27 }
 0x267   : > { %v1025_v34 = vpop.f32.mrf.mxu0 }
 0x268   : > { %v1028_v37 = vmax.f32 %v1025_v34, 0.0 }
 0x26a   : > { %1449 = vmatmul.msk.f32.vlgmr.msra.gmra.mxu1 %vm1033_vm0, %v1028_v37 }
 0x2e7   : > { %v1054_v38 = vpop.f32.mrf.mxu1 }
 0x2e8   : > { %v1450_v39 = vmul.f32 -1.442695, %v1054_v38 }
 0x2ea   : > { %1797 = vpow2.f32 %v1450_v39 }
 0x2f0   : > { %v1798_v41 = vpop.eup %1797 }
 0x2f1   : > { %v1060_v30 = vadd.f32 1.0, %v1798_v41 }
 0x2f3   : > { %1799 = vrcp.f32 %v1060_v30  ;;  %v1072_v47 = vand.u32 2147483648, %v1060_v30  ;;  %v1070_v51 = vand.u32 2147483647, %v1060_v30  ;;  %vm1066_vm2 = vweird.f32 %v1060_v30 }
 0x2f5   : > { %v1073_v57 = vor.u32 1.1754944e-38, %v1072_v47  ;;  %vm1071_vm4 = vcmp.eq.f32.partialorder %v1070_v51, 8.507059e+37 }
 0x2f9   : > { %v1800_v35 = vpop.eup %1799 }
 0x2fa   : > { %v1062_v42 = vmul.f32 %v1800_v35, %v1060_v30  ;;  %vm1067_vm1 = vweird.f32 %v1800_v35 }
 0x2fb   : > { %vm1068_vm3 = vmor %vm1066_vm2, %vm1067_vm1 }
 0x2fc   : > { %v1063_v7 = vsub.f32 1.0, %v1062_v42 }
 0x2fe   : > { %v1064_v10 = vmul.f32 %v1800_v35, %v1063_v7 }
 0x300   : > { %v1065_v53 = vadd.f32 %v1800_v35, %v1064_v10 }
 0x302   : > { %v1069_v58 = vsel %vm1068_vm3, %v1800_v35, %v1065_v53 }
 0x303   : > { %v1074_v59 = vsel %vm1071_vm4, %v1073_v57, %v1069_v58 }
 0x304   : > { %v1076_v61 = vadd.f32 1.0, %v1074_v59 }
 0x306   : > { %1077 = vst [vmem:[#allocation4] sm:$0x1] %v1076_v61 }
 0x307 PF: > { %p1451_p11 = scmp.ne.s32.totalorder %s1984_s8, 1 }
 0x308   : > { %s1477_s20 = sshll.u32 (!%p1451_p11), %s1980_s30, 7 }
 0x309   : > { %1081 = sbr.rel (%p1451_p11) target bundleno = 819 (0x333), region = 72  ;;  %s2612_s23 = scalar_lea.vmem (!%p1451_p11), [#allocation2], %s1477_s20 }
 0x30e   : > { %v2610_v60 = vld [vmem:[#allocation4] ss:$0 sm:$0xff]  ;;  %v1637_v40 = vld [vmem:[%s2612_s23 + $0x8] sm:$0xff]   ;;  %v1638_v44 = vld [vmem:[%s2612_s23 + $0x10] sm:$0xff]  }
 0x30f   : > { %v1559_v25 = vld [vmem:[%s2612_s23] sm:$0xff]   ;;  %v1564_v63 = vunpack.c.l.bf16 %v1637_v40  ;;  %v1565_v52 = vunpack.c.h.bf16 %v1637_v40  ;;  %v1639_v8 = vld [vmem:[%s2612_s23 + $0x18] sm:$0xff]   ;;  %v1568_v9 = vunpack.c.l.bf16 %v1638_v44  ;;  %v1569_v11 = vunpack.c.h.bf16 %v1638_v44  ;;  %v1641_v56 = vld [vmem:[%s2612_s23 + $0x28] sm:$0xff]  }
 0x310   : > { %v1560_v62 = vunpack.c.l.bf16 %v1559_v25  ;;  %v1561_v1 = vunpack.c.h.bf16 %v1559_v25  ;;  %v1640_v23 = vld [vmem:[%s2612_s23 + $0x20] sm:$0xff]   ;;  %v1572_v46 = vunpack.c.l.bf16 %v1639_v8  ;;  %v1573_v55 = vunpack.c.h.bf16 %v1639_v8  ;;  %v1642_v36 = vld [vmem:[%s2612_s23 + $0x30] sm:$0xff]   ;;  %v1643_v22 = vld [vmem:[%s2612_s23 + $0x38] sm:$0xff]  }
 0x311   : > { %v1155_v33 = vmul.f32 %v2610_v60, %v1564_v63  ;;  %v1156_v54 = vmul.f32 %v2610_v60, %v1565_v52  ;;  %v1157_v6 = vmul.f32 %v2610_v60, %v1568_v9  ;;  %v1576_v16 = vunpack.c.l.bf16 %v1640_v23  ;;  %v1644_v43 = vld [vmem:[%s2612_s23 + $0x40] sm:$0xff]   ;;  %v1645_v15 = vld [vmem:[%s2612_s23 + $0x48] sm:$0xff]   ;;  %v1646_v21 = vld [vmem:[%s2612_s23 + $0x50] sm:$0xff]  }
 0x312   : > { %v1153_v31 = vmul.f32 %v2610_v60, %v1560_v62  ;;  %v1154_v32 = vmul.f32 %v2610_v60, %v1561_v1  ;;  %v1158_v17 = vmul.f32 %v2610_v60, %v1569_v11  ;;  %v1577_v18 = vunpack.c.h.bf16 %v1640_v23  ;;  %v1647_v37 = vld [vmem:[%s2612_s23 + $0x58] sm:$0xff]   ;;  %v1648_v35 = vld [vmem:[%s2612_s23 + $0x60] sm:$0xff]   ;;  %v1649_v51 = vld [vmem:[%s2612_s23 + $0x68] sm:$0xff]  }
 0x313   : > { %1187 = vst [vmem:[%s2250_s10 + $0x10] sm:$0xff] %v1155_v33  ;;  %v1159_v48 = vmul.f32 %v2610_v60, %v1572_v46  ;;  %v1580_v49 = vunpack.c.l.bf16 %v1641_v56  ;;  %v1160_v50 = vmul.f32 %v2610_v60, %v1573_v55  ;;  %v1581_v12 = vunpack.c.h.bf16 %v1641_v56  ;;  %v1650_v61 = vld [vmem:[%s2612_s23 + $0x70] sm:$0xff]   ;;  %v1651_v1 = vld [vmem:[%s2612_s23 + $0x78] sm:$0xff]  }
 0x314   : > { %1185 = vst [vmem:[%s2250_s10] sm:$0xff] %v1153_v31  ;;  %v1161_v24 = vmul.f32 %v2610_v60, %v1576_v16  ;;  %v1584_v26 = vunpack.c.l.bf16 %v1642_v36  ;;  %v1162_v2 = vmul.f32 %v2610_v60, %v1577_v18  ;;  %v1585_v13 = vunpack.c.h.bf16 %v1642_v36 }
 0x315   : > { %1186 = vst [vmem:[%s2250_s10 + $0x8] sm:$0xff] %v1154_v32  ;;  %v1163_v45 = vmul.f32 %v2610_v60, %v1580_v49  ;;  %v1588_v14 = vunpack.c.l.bf16 %v1643_v22  ;;  %v1164_v0 = vmul.f32 %v2610_v60, %v1581_v12  ;;  %v1589_v4 = vunpack.c.h.bf16 %v1643_v22 }
 0x316   : > { %1188 = vst [vmem:[%s2250_s10 + $0x18] sm:$0xff] %v1156_v54  ;;  %v1165_v19 = vmul.f32 %v2610_v60, %v1584_v26  ;;  %v1592_v3 = vunpack.c.l.bf16 %v1644_v43  ;;  %v1166_v5 = vmul.f32 %v2610_v60, %v1585_v13  ;;  %v1593_v20 = vunpack.c.h.bf16 %v1644_v43 }
 0x317   : > { %1189 = vst [vmem:[%s2250_s10 + $0x20] sm:$0xff] %v1157_v6  ;;  %v1167_v27 = vmul.f32 %v2610_v60, %v1588_v14  ;;  %v1596_v28 = vunpack.c.l.bf16 %v1645_v15  ;;  %v1168_v29 = vmul.f32 %v2610_v60, %v1589_v4  ;;  %v1597_v34 = vunpack.c.h.bf16 %v1645_v15 }
 0x318   : > { %1190 = vst [vmem:[%s2250_s10 + $0x28] sm:$0xff] %v1158_v17  ;;  %v1169_v38 = vmul.f32 %v2610_v60, %v1592_v3  ;;  %v1600_v39 = vunpack.c.l.bf16 %v1646_v21  ;;  %v1170_v41 = vmul.f32 %v2610_v60, %v1593_v20  ;;  %v1601_v30 = vunpack.c.h.bf16 %v1646_v21 }
 0x319   : > { %1191 = vst [vmem:[%s2250_s10 + $0x30] sm:$0xff] %v1159_v48  ;;  %v1171_v42 = vmul.f32 %v2610_v60, %v1596_v28  ;;  %v1604_v7 = vunpack.c.l.bf16 %v1647_v37  ;;  %v1172_v47 = vmul.f32 %v2610_v60, %v1597_v34  ;;  %v1605_v10 = vunpack.c.h.bf16 %v1647_v37 }
 0x31a   : > { %1192 = vst [vmem:[%s2250_s10 + $0x38] sm:$0xff] %v1160_v50  ;;  %v1173_v53 = vmul.f32 %v2610_v60, %v1600_v39  ;;  %v1608_v57 = vunpack.c.l.bf16 %v1648_v35  ;;  %v1174_v58 = vmul.f32 %v2610_v60, %v1601_v30  ;;  %v1609_v59 = vunpack.c.h.bf16 %v1648_v35 }
 0x31b   : > { %1193 = vst [vmem:[%s2250_s10 + $0x40] sm:$0xff] %v1161_v24  ;;  %v1175_v25 = vmul.f32 %v2610_v60, %v1604_v7  ;;  %v1612_v40 = vunpack.c.l.bf16 %v1649_v51  ;;  %v1176_v44 = vmul.f32 %v2610_v60, %v1605_v10  ;;  %v1613_v62 = vunpack.c.h.bf16 %v1649_v51 }
 0x31c   : > { %1194 = vst [vmem:[%s2250_s10 + $0x48] sm:$0xff] %v1162_v2  ;;  %v1177_v63 = vmul.f32 %v2610_v60, %v1608_v57  ;;  %v1616_v52 = vunpack.c.l.bf16 %v1650_v61  ;;  %v1178_v8 = vmul.f32 %v2610_v60, %v1609_v59  ;;  %v1617_v9 = vunpack.c.h.bf16 %v1650_v61 }
 0x31d   : > { %1195 = vst [vmem:[%s2250_s10 + $0x50] sm:$0xff] %v1163_v45  ;;  %v1179_v11 = vmul.f32 %v2610_v60, %v1612_v40  ;;  %v1620_v23 = vunpack.c.l.bf16 %v1651_v1  ;;  %v1180_v31 = vmul.f32 %v2610_v60, %v1613_v62  ;;  %v1621_v32 = vunpack.c.h.bf16 %v1651_v1 }
 0x31e   : > { %1196 = vst [vmem:[%s2250_s10 + $0x58] sm:$0xff] %v1164_v0  ;;  %v1181_v33 = vmul.f32 %v2610_v60, %v1616_v52  ;;  %v1182_v46 = vmul.f32 %v2610_v60, %v1617_v9 }
 0x31f   : > { %1197 = vst [vmem:[%s2250_s10 + $0x60] sm:$0xff] %v1165_v19  ;;  %v1183_v54 = vmul.f32 %v2610_v60, %v1620_v23  ;;  %v1184_v55 = vmul.f32 %v2610_v60, %v1621_v32 }
 0x320   : > { %1198 = vst [vmem:[%s2250_s10 + $0x68] sm:$0xff] %v1166_v5 }
 0x321   : > { %1199 = vst [vmem:[%s2250_s10 + $0x70] sm:$0xff] %v1167_v27 }
 0x322   : > { %1200 = vst [vmem:[%s2250_s10 + $0x78] sm:$0xff] %v1168_v29 }
 0x323   : > { %1201 = vst [vmem:[%s2250_s10 + $0x80] sm:$0xff] %v1169_v38 }
 0x324   : > { %1202 = vst [vmem:[%s2250_s10 + $0x88] sm:$0xff] %v1170_v41 }
 0x325   : > { %1203 = vst [vmem:[%s2250_s10 + $0x90] sm:$0xff] %v1171_v42 }
 0x326   : > { %1204 = vst [vmem:[%s2250_s10 + $0x98] sm:$0xff] %v1172_v47 }
 0x327   : > { %1205 = vst [vmem:[%s2250_s10 + $0xa0] sm:$0xff] %v1173_v53 }
 0x328   : > { %1206 = vst [vmem:[%s2250_s10 + $0xa8] sm:$0xff] %v1174_v58 }
 0x329   : > { %1207 = vst [vmem:[%s2250_s10 + $0xb0] sm:$0xff] %v1175_v25 }
 0x32a   : > { %1208 = vst [vmem:[%s2250_s10 + $0xb8] sm:$0xff] %v1176_v44 }
 0x32b   : > { %1209 = vst [vmem:[%s2250_s10 + $0xc0] sm:$0xff] %v1177_v63 }
 0x32c   : > { %1210 = vst [vmem:[%s2250_s10 + $0xc8] sm:$0xff] %v1178_v8 }
 0x32d   : > { %1211 = vst [vmem:[%s2250_s10 + $0xd0] sm:$0xff] %v1179_v11 }
 0x32e   : > { %1212 = vst [vmem:[%s2250_s10 + $0xd8] sm:$0xff] %v1180_v31 }
 0x32f   : > { %1213 = vst [vmem:[%s2250_s10 + $0xe0] sm:$0xff] %v1181_v33 }
 0x330   : > { %1214 = vst [vmem:[%s2250_s10 + $0xe8] sm:$0xff] %v1182_v46 }
 0x331   : > { %1215 = vst [vmem:[%s2250_s10 + $0xf0] sm:$0xff] %v1183_v54 }
 0x332   : > { %1216 = vst [vmem:[%s2250_s10 + $0xf8] sm:$0xff] %v1184_v55 }
 0x333 PF: > { %s2815_s9 = sld [smem:[#allocation15_spill]]  ;;  %s1225_s29 = smul.u32 %s1980_s30, %s1984_s8 }
 0x334   : > { %s1233_s21 = sshll.u32 %s2250_s10, 4  ;;  %s2816_s11 = sld [smem:[#allocation30_spill]]  ;;  %s1234_s21 = int_to_ptr.vmem [resolvable:$true] %s1233_s21 }
 0x335   : > { %s1455_s7 = sshll.u32 %s1225_s29, 5  ;;  %s1218_s23 = scalar_lea.sflag [#allocation7], %s387_s0 }
 0x339   : > { %s1456_s2 = sshll.u32 %s2815_s9, 7 }
 0x33a   : > { %s1230_s12 = sadd.s32 %s1456_s2, %s1455_s7  ;;  %s2817_s15 = smov %s2816_s11 }
 0x33b   : > { %s1457_s16 = sshll.u32 %s1230_s12, 3  ;;  %s1882_s10 = scalar_lea.hbm %s2817_s15, 2048 }
 0x33c   : > { %s1232_s14 = scalar_lea.hbm %s2816_s11, %s1457_s16 }
 0x33d   : > { %s1235_s20 = sshll.u32 %s1232_s14, 4  ;;  %s1236_s20 = int_to_ptr.hbm [resolvable:$true] %s1235_s20 }
 0x33e   : > { %s1876_s1 = sshra.s32 %s1236_s20, 4  ;;  %s1877_s1 = int_to_ptr.hbm [resolvable:$true] %s1876_s1 }
 0x33f   : > { %s1878_s3 = scalar_lea.hbm %s1877_s1, 256  ;;  %p1883_p3 = scmp.lt.s32.totalorder %s1877_s1, %s2817_s15 }
 0x340   : > { %p1879_p12 = scmp.ne.s32.totalorder %s1877_s1, %s1878_s3  ;;  %p1884_p6 = scmp.lt.s32.totalorder %s1882_s10, %s1878_s3 }
 0x342   : > { %p1880_p13 = pnand %p1879_p12, %p2170_p0  ;;  %p1885_p4 = por %p1884_p6, %p1883_p3 }
 0x344   : > { %p1881_p1 = pneg %p1880_p13 }
 0x346   : > { %p1886_p9 = pnand %p1885_p4, %p1881_p1 }
 0x348   : > { %1889 = shalt.err (!%p1886_p9)
}
 0x349   : > { %s2009_s0 = smov 128   ;;  %s2010_s2 = smov 8  }
 0x34a   : > { %1672 = dma.vmem_to_hbm [thread:$0]  (%p2170_p0), %s1234_s21, 4096, %s1236_s20, %s1218_s23, %s2009_s0, %s2009_s0, %s2010_s2  }
 0x34b PF: > { %p1686_p10 = scmp.ge.s32.totalorder %s2004_s13, 2  ;;  %s1250_s7 = sand.u32 1, %s1956_s24  }
 0x34c   : > { %s1251_s12 = scalar_lea.sflag [#allocation7], %s1250_s7 }
 0x34d   : > { %p1682_p5 = pnand %p1686_p10, %p2179_p2 }
 0x34f   : > { %p1683_p7 = pneg %p1682_p5 }
 0x351   : > { %1951 = dma.done.wait (%p1683_p7), %s1251_s12, 4096  }
 0x352   : > { %1953 = vsyncadd (%p1683_p7), %s1251_s12, 4294963200  ;;  %s26_s13 = sadd.s32 1, %s2004_s13   ;;  %s2819_s3 = sld [smem:[#allocation14_spill]] }
 0x353   : > { %p2718_p8 = scmp.ge.s32.totalorder %s26_s13, 18   ;;  %s2820_s29 = sld [smem:[#allocation22_spill]] }
 0x354   : > { %s2821_s30 = sld [smem:[#allocation16_spill]]  ;;  %s2827_s24 = smov %s1960_s25 }
 0x355   : > { %s2822_s8 = sld [smem:[#allocation17_spill]]  ;;  %s2828_s25 = smov %s1964_s26 }
 0x356   : > { %s2823_s9 = sld [smem:[#allocation18_spill]]  ;;  %s2829_s26 = smov %s2177_s27 }
 0x357   : > { %s2824_s10 = sld [smem:[#allocation19_spill]]  ;;  %s2830_s27 = smov %s1972_s28 }
 0x358   : > { %s2825_s11 = sld [smem:[#allocation20_spill]]  ;;  %s2831_s28 = smov %s2819_s3 }
 0x359   : > { %s2826_s12 = sld [smem:[#allocation21_spill]]  ;;  %25 = sbr.rel (!%p2718_p8) target bundleno = 21 (0x15), region = 124 }
 0x35e   :  { %1257 = vsyncpa [#allocation6], 1 }
 0x35f   :  { %1259 = vsyncpa [#allocation6 + $0x1], 1 }
 0x360   :  { %1260 = vsyncpa [#allocation9], 1 }
 0x361   :  { %1262 = vsyncpa [#allocation9 + $0x1], 1 }
 0x362   :  { %1263 = vsyncpa [#allocation7], 1 }
 0x363   :  { %1265 = vsyncpa [#allocation7 + $0x1], 1 }

</bundles_post_ra>
